<compile_context>
chip_gen: v7x
topology: tpu7x:2x2x1
jax: 0.10.0
libtpu: 0.0.40
codegen_flags: <defaults>
</compile_context>

<pallas_src>
from functools import partial

import jax
import jax.numpy as jnp
from jax import lax
from jax.experimental import pallas as pl
from jax.experimental.pallas import tpu as pltpu

EPS = 1e-5
NEG_SLOPE = 0.01  # PyTorch LeakyReLU default

# (output parity, neighbor offset) -> kernel tap index (None = no contribution)
_TAP = {(0, 0): 1, (0, 1): None, (1, 0): 2, (1, 1): 0}


# ----------------------------- shared tile math -----------------------------

def _conv_tile(x_ref, halo_ref, w_ref):
    """Polyphase transposed-conv for one tile.

    x_ref:    (1, TH, W+1, Cin)  current image rows (right zero halo included)
    halo_ref: (1,     W+1, Cin)  the row just below the tile (zeros at image end)
    w_ref:    (4*Cin, 4*Cout)    rows = (dh,dw,cin), cols = (ph,pw,cout)
    returns   (TH*W, 4*Cout) float32
    """
    _, TH, Wp1, Cin = x_ref.shape
    W = Wp1 - 1
    xc = x_ref[0]                                            # (TH, W+1, Cin)
    if TH > 1:
        nxt = jnp.concatenate([xc[1:], halo_ref[...]], axis=0)
    else:
        nxt = halo_ref[...]
    wm = w_ref[...]                                          # (4*Cin, 4*Cout)

    y = None
    for dh, src in ((0, xc), (1, nxt)):
        for dw in (0, 1):
            p = src[:, dw:dw + W, :].reshape(TH * W, Cin)
            ws = wm[(dh * 2 + dw) * Cin:(dh * 2 + dw + 1) * Cin, :]
            t = jnp.dot(p, ws, preferred_element_type=jnp.float32)
            y = t if y is None else y + t
    return y


# ------------------------------ Pallas kernels ------------------------------

def _stats_kernel(x_ref, halo_ref, w_ref, sum_ref, ssq_ref):
    # Pass 1: per-tile channel sums / sums-of-squares only (no y writeback).
    y = _conv_tile(x_ref, halo_ref, w_ref)                   # (THW, 4*Cout) f32
    sum_ref[...] = jnp.sum(y, axis=0, keepdims=True)[None]   # (1, 1, 4*Cout)
    ssq_ref[...] = jnp.sum(y * y, axis=0, keepdims=True)[None]


def _out_kernel(x_ref, halo_ref, w_ref, scale_ref, shift_ref, o_ref):
    # Pass 2: recompute the matmul, fuse BN affine + LeakyReLU, store packed.
    y = _conv_tile(x_ref, halo_ref, w_ref)                   # (THW, 4*Cout) f32
    y = y * scale_ref[...] + shift_ref[...]
    o_ref[...] = jnp.where(y >= 0.0, y, NEG_SLOPE * y).astype(o_ref.dtype)[None]


# ------------------------------ host wrapper --------------------------------

def _build_weight_matrix(w_t):
    """ConvTranspose2d weight (Cin, Cout, 3, 3) -> polyphase (4*Cin, 4*Cout)."""
    Cin, Cout, _, _ = w_t.shape
    w_mat = jnp.zeros((4 * Cin, 4 * Cout), jnp.float32)
    for ph in (0, 1):
        for pw in (0, 1):
            for dh in (0, 1):
                for dw in (0, 1):
                    kh = _TAP[(ph, dh)]
                    kw = _TAP[(pw, dw)]
                    if kh is None or kw is None:
                        continue
                    r0 = (dh * 2 + dw) * Cin
                    c0 = (ph * 2 + pw) * Cout
                    w_mat = w_mat.at[r0:r0 + Cin, c0:c0 + Cout].set(
                        w_t[:, :, kh, kw].astype(jnp.float32))
    return w_mat


def _pick_th(H, W, N):
    """Largest divisor TH of H with TH*W <= 1024 rows; keep >= 2 tiles (v7x)."""
    best = 1
    for th in range(1, H + 1):
        if H % th == 0 and th * W <= 1024:
            best = th
    if N * (H // best) < 2:                 # give the second TensorCore work
        for th in range(best - 1, 0, -1):
            if H % th == 0:
                best = th
                break
    return best


@partial(jax.jit, static_argnames=("compute_dtype",))
def upsample_block_forward(x_nchw, w_t, bias, gamma, beta,
                           *, compute_dtype=jnp.bfloat16):
    """UpsampleBlock.forward: ConvT(3, s=2, p=1, op=1) -> BN2d(train) -> LeakyReLU."""
    del bias  # exactly cancelled by training-mode BN mean subtraction
    N, Cin, H, W = x_nchw.shape
    _, Cout, _, _ = w_t.shape
    Ho, Wo = 2 * H, 2 * W
    C_pack = 4 * Cout
    KKC = 4 * Cin
    Wp1 = W + 1

    TH = _pick_th(H, W, N)
    nt = H // TH
    T = N * nt                    # grid size (one tile = TH image rows)
    THW = TH * W
    item = jnp.dtype(compute_dtype).itemsize

    # --- input prep (single small fused XLA op: transpose + halo pad + cast) ---
    x_nhwc = jnp.transpose(x_nchw, (0, 2, 3, 1)).astype(jnp.float32)
    x_pad = jnp.pad(x_nhwc, ((0, 0), (0, 1), (0, 1), (0, 0)))        # (N,H+1,W+1,Cin)
    x_blocks = x_pad[:, :H].astype(compute_dtype).reshape(T, TH, Wp1, Cin)
    # row just below each tile (zero row for the last tile of every image)
    halo = x_pad[:, TH::TH][:, :nt].astype(compute_dtype).reshape(T, Wp1, Cin)

    w_mat = _build_weight_matrix(w_t).astype(compute_dtype)          # (4Cin, 4Cout)

    compiler_params = pltpu.CompilerParams(
        dimension_semantics=("parallel",),        # megacore sharding on v7x
        vmem_limit_bytes=48 * 1024 * 1024,        # <= v7x 64 MiB physical budget
    )

    in_specs_common = [
        pl.BlockSpec((1, TH, Wp1, Cin), lambda i: (i, 0, 0, 0)),
        pl.BlockSpec((1, Wp1, Cin), lambda i: (i, 0, 0)),
        pl.BlockSpec((KKC, C_pack), lambda i: (0, 0)),
    ]

    # ---- pass 1: per-tile channel statistics (tiny outputs, no y writeback) ----
    flops = 2 * T * THW * KKC * C_pack
    cost1 = pl.CostEstimate(
        flops=flops, transcendentals=0,
        bytes_accessed=item * (T * TH * Wp1 * Cin + T * Wp1 * Cin + KKC * C_pack)
        + 4 * (2 * T * C_pack))
    psum, pssq = pl.pallas_call(
        _stats_kernel,
        out_shape=(jax.ShapeDtypeStruct((T, 1, C_pack), jnp.float32),
                   jax.ShapeDtypeStruct((T, 1, C_pack), jnp.float32)),
        grid=(T,),
        in_specs=in_specs_common,
        out_specs=(pl.BlockSpec((1, 1, C_pack), lambda i: (i, 0, 0)),
                   pl.BlockSpec((1, 1, C_pack), lambda i: (i, 0, 0))),
        compiler_params=compiler_params,
        cost_estimate=cost1,
    )(x_blocks, halo, w_mat)

    # ---- tiny cross-tile reduction + BN scale/shift (f32, wrapper side) --------
    cnt = jnp.float32(N * Ho * Wo)                       # = 4 * N * H * W
    col_sum = jnp.sum(psum[:, 0, :], axis=0)             # (4*Cout,)
    col_ssq = jnp.sum(pssq[:, 0, :], axis=0)
    ch_sum = col_sum.reshape(4, Cout).sum(axis=0)        # fold the 4 parities
    ch_ssq = col_ssq.reshape(4, Cout).sum(axis=0)
    mean = ch_sum / cnt
    var = jnp.maximum(ch_ssq / cnt - mean * mean, 0.0)   # cancellation guard
    inv = lax.rsqrt(var + EPS)
    scale_c = gamma.astype(jnp.float32) * inv
    shift_c = beta.astype(jnp.float32) - mean * scale_c
    scale = jnp.tile(scale_c, 4).reshape(1, C_pack)      # (ph, pw, c) column order
    shift = jnp.tile(shift_c, 4).reshape(1, C_pack)

    # ---- pass 2: recompute matmul, fused BN + LeakyReLU, packed-parity store ---
    cost2 = pl.CostEstimate(
        flops=flops + 3 * T * THW * C_pack, transcendentals=0,
        bytes_accessed=item * (T * TH * Wp1 * Cin + T * Wp1 * Cin + KKC * C_pack)
        + 4 * (T * THW * C_pack + 2 * C_pack))
    out_packed = pl.pallas_call(
        _out_kernel,
        out_shape=jax.ShapeDtypeStruct((T, THW, C_pack), jnp.float32),
        grid=(T,),
        in_specs=in_specs_common + [
            pl.BlockSpec((1, C_pack), lambda i: (0, 0)),
            pl.BlockSpec((1, C_pack), lambda i: (0, 0)),
        ],
        out_specs=pl.BlockSpec((1, THW, C_pack), lambda i: (i, 0, 0)),
        compiler_params=compiler_params,
        cost_estimate=cost2,
    )(x_blocks, halo, w_mat, scale, shift)

    # ---- single fused reshape+transpose to NCHW --------------------------------
    out = out_packed.reshape(N, nt, TH, W, 2, 2, Cout)       # (n,t,h,w,ph,pw,c)
    out = jnp.transpose(out, (0, 6, 1, 2, 4, 3, 5)).reshape(N, Cout, Ho, Wo)
    return out


# -------------------------------- reference ---------------------------------

def _reference_forward(x, w_t, bias, gamma, beta):
    """Pure-JAX f32 reference (lax conv) for correctness checking."""
    Cin, Cout, K, _ = w_t.shape
    w_conv = jnp.transpose(w_t[:, :, ::-1, ::-1], (1, 0, 2, 3))  # (Cout, Cin, K, K)
    y = lax.conv_general_dilated(
        x, w_conv, window_strides=(1, 1),
        padding=((K - 1 - 1, K - 1 - 1 + 1), (K - 1 - 1, K - 1 - 1 + 1)),
        lhs_dilation=(2, 2),
        dimension_numbers=("NCHW", "OIHW", "NCHW"),
    )
    y = y + bias.reshape(1, -1, 1, 1)
    mean = y.mean(axis=(0, 2, 3), keepdims=True)
    var = ((y - mean) ** 2).mean(axis=(0, 2, 3), keepdims=True)
    y = (y - mean) * lax.rsqrt(var + EPS) * gamma.reshape(1, -1, 1, 1) \
        + beta.reshape(1, -1, 1, 1)
    return jnp.where(y >= 0.0, y, NEG_SLOPE * y)


if __name__ == "__main__":
    key = jax.random.PRNGKey(0)
    k_x, k_w, k_b = jax.random.split(key, 3)

    N, Cin, Cout, H, W = 2, 4, 8, 16, 16

    x = jax.random.normal(k_x, (N, Cin, H, W), dtype=jnp.float32)
    # ConvTranspose2d weight shape: (in_channels, out_channels, K, K)
    w_t = 0.1 * jax.random.normal(k_w, (Cin, Cout, 3, 3), dtype=jnp.float32)
    bias = 0.1 * jax.random.normal(k_b, (Cout,), dtype=jnp.float32)
    # BatchNorm2d defaults: weight = 1, bias = 0
    gamma = jnp.ones((Cout,), dtype=jnp.float32)
    beta = jnp.zeros((Cout,), dtype=jnp.float32)

    ref = jax.block_until_ready(_reference_forward(x, w_t, bias, gamma, beta))

    # f32 compute path: tight check against the f32 reference.
    out32 = jax.block_until_ready(
        upsample_block_forward(x, w_t, bias, gamma, beta, compute_dtype=jnp.float32))
    assert out32.shape == (N, Cout, 2 * H, 2 * W), out32.shape
    err32 = float(jnp.max(jnp.abs(out32 - ref)))
    assert jnp.allclose(out32, ref, rtol=1e-4, atol=1e-4), err32

    # bf16 fast path (default): MXU streams in bf16, f32 accumulate/stats,
    # so tolerance vs. the f32 reference is correspondingly looser.
    outbf = jax.block_until_ready(
        upsample_block_forward(x, w_t, bias, gamma, beta, compute_dtype=jnp.bfloat16))
    assert outbf.shape == (N, Cout, 2 * H, 2 * W), outbf.shape
    errbf = float(jnp.max(jnp.abs(outbf - ref)))
    assert jnp.allclose(outbf, ref, rtol=5e-2, atol=5e-2), errbf

    print("KERNEL_OK")
</pallas_src>

<mosaic_0001>
module attributes {stable_mosaic.version = 11 : i64} {
  func.func @_stats_kernel(%arg0: i32, %arg1: memref<1x16x17x4xf32, #tpu.memory_space<vmem>>, %arg2: memref<1x17x4xf32, #tpu.memory_space<vmem>>, %arg3: memref<16x32xf32, #tpu.memory_space<vmem>>, %arg4: memref<1x1x32xf32, #tpu.memory_space<vmem>>, %arg5: memref<1x1x32xf32, #tpu.memory_space<vmem>>) attributes {dimension_semantics = [#tpu.dimension_semantics<parallel>], iteration_bounds = array<i64: 2>, scalar_prefetch = 0 : i64, scratch_operands = 0 : i64, tpu.core_type = #tpu.core_type<tc>, window_params = [{transform_indices = @transform_0, window_bounds = array<i64: 1, 16, 17, 4>}, {transform_indices = @transform_1, window_bounds = array<i64: 1, 17, 4>}, {pipeline_mode = #tpu.pipeline_mode<synchronous>, transform_indices = @transform_2, window_bounds = array<i64: 16, 32>}, {transform_indices = @transform_3, window_bounds = array<i64: 1, 1, 32>}, {transform_indices = @transform_4, window_bounds = array<i64: 1, 1, 32>}]} {
    %c0 = arith.constant 0 : index
    %c0_0 = arith.constant 0 : index
    %c0_1 = arith.constant 0 : index
    %c0_2 = arith.constant 0 : index
    %0 = vector.load %arg1[%c0, %c0_0, %c0_1, %c0_2] : memref<1x16x17x4xf32, #tpu.memory_space<vmem>>, vector<1x16x17x4xf32>
    %1 = vector.shape_cast %0 : vector<1x16x17x4xf32> to vector<16x17x4xf32>
    %2 = vector.extract_strided_slice %1 {offsets = [1, 0, 0], sizes = [15, 17, 4], strides = [1, 1, 1]} : vector<16x17x4xf32> to vector<15x17x4xf32>
    %c0_3 = arith.constant 0 : index
    %c0_4 = arith.constant 0 : index
    %c0_5 = arith.constant 0 : index
    %3 = vector.load %arg2[%c0_3, %c0_4, %c0_5] : memref<1x17x4xf32, #tpu.memory_space<vmem>>, vector<1x17x4xf32>
    %4 = tpu.concatenate %2, %3 in 0 : vector<15x17x4xf32>, vector<1x17x4xf32> -> vector<16x17x4xf32>
    %c0_6 = arith.constant 0 : index
    %c0_7 = arith.constant 0 : index
    %5 = vector.load %arg3[%c0_6, %c0_7] : memref<16x32xf32, #tpu.memory_space<vmem>>, vector<16x32xf32>
    %6 = vector.extract_strided_slice %1 {offsets = [0, 0, 0], sizes = [16, 16, 4], strides = [1, 1, 1]} : vector<16x17x4xf32> to vector<16x16x4xf32>
    %7 = vector.shape_cast %6 : vector<16x16x4xf32> to vector<256x4xf32>
    %8 = vector.extract_strided_slice %5 {offsets = [0, 0], sizes = [4, 32], strides = [1, 1]} : vector<16x32xf32> to vector<4x32xf32>
    %cst = arith.constant dense<0.000000e+00> : vector<256x32xf32>
    %9 = tpu.matmul %7, %8, %cst {dimension_numbers = #tpu.dot_dimension_numbers<[1], [0], [0], [1], [0, 0, 1, 1], [], []>} : vector<256x4xf32>, vector<4x32xf32>, vector<256x32xf32> -> vector<256x32xf32>
    %10 = vector.extract_strided_slice %1 {offsets = [0, 1, 0], sizes = [16, 16, 4], strides = [1, 1, 1]} : vector<16x17x4xf32> to vector<16x16x4xf32>
    %11 = vector.shape_cast %10 : vector<16x16x4xf32> to vector<256x4xf32>
    %12 = vector.extract_strided_slice %5 {offsets = [4, 0], sizes = [4, 32], strides = [1, 1]} : vector<16x32xf32> to vector<4x32xf32>
    %cst_8 = arith.constant dense<0.000000e+00> : vector<256x32xf32>
    %13 = tpu.matmul %11, %12, %cst_8 {dimension_numbers = #tpu.dot_dimension_numbers<[1], [0], [0], [1], [0, 0, 1, 1], [], []>} : vector<256x4xf32>, vector<4x32xf32>, vector<256x32xf32> -> vector<256x32xf32>
    %14 = arith.addf %9, %13 : vector<256x32xf32>
    %15 = vector.extract_strided_slice %4 {offsets = [0, 0, 0], sizes = [16, 16, 4], strides = [1, 1, 1]} : vector<16x17x4xf32> to vector<16x16x4xf32>
    %16 = vector.shape_cast %15 : vector<16x16x4xf32> to vector<256x4xf32>
    %17 = vector.extract_strided_slice %5 {offsets = [8, 0], sizes = [4, 32], strides = [1, 1]} : vector<16x32xf32> to vector<4x32xf32>
    %cst_9 = arith.constant dense<0.000000e+00> : vector<256x32xf32>
    %18 = tpu.matmul %16, %17, %cst_9 {dimension_numbers = #tpu.dot_dimension_numbers<[1], [0], [0], [1], [0, 0, 1, 1], [], []>} : vector<256x4xf32>, vector<4x32xf32>, vector<256x32xf32> -> vector<256x32xf32>
    %19 = arith.addf %14, %18 : vector<256x32xf32>
    %20 = vector.extract_strided_slice %4 {offsets = [0, 1, 0], sizes = [16, 16, 4], strides = [1, 1, 1]} : vector<16x17x4xf32> to vector<16x16x4xf32>
    %21 = vector.shape_cast %20 : vector<16x16x4xf32> to vector<256x4xf32>
    %22 = vector.extract_strided_slice %5 {offsets = [12, 0], sizes = [4, 32], strides = [1, 1]} : vector<16x32xf32> to vector<4x32xf32>
    %cst_10 = arith.constant dense<0.000000e+00> : vector<256x32xf32>
    %23 = tpu.matmul %21, %22, %cst_10 {dimension_numbers = #tpu.dot_dimension_numbers<[1], [0], [0], [1], [0, 0, 1, 1], [], []>} : vector<256x4xf32>, vector<4x32xf32>, vector<256x32xf32> -> vector<256x32xf32>
    %24 = arith.addf %19, %23 : vector<256x32xf32>
    %cst_11 = arith.constant dense<0.000000e+00> : vector<32xf32>
    %25 = vector.multi_reduction <add>, %24, %cst_11 [0] : vector<256x32xf32> to vector<32xf32>
    %26 = vector.shape_cast %25 : vector<32xf32> to vector<1x32xf32>
    %27 = vector.shape_cast %26 : vector<1x32xf32> to vector<1x1x32xf32>
    %c0_12 = arith.constant 0 : index
    %c0_13 = arith.constant 0 : index
    %c0_14 = arith.constant 0 : index
    %28 = vector.load %arg4[%c0_12, %c0_13, %c0_14] : memref<1x1x32xf32, #tpu.memory_space<vmem>>, vector<1x1x32xf32>
    tpu.vector_store %arg4[%c0_12, %c0_13, %c0_14], %27 {strides = array<i32>} : memref<1x1x32xf32, #tpu.memory_space<vmem>>, vector<1x1x32xf32>,
    %29 = arith.mulf %24, %24 : vector<256x32xf32>
    %cst_15 = arith.constant dense<0.000000e+00> : vector<32xf32>
    %30 = vector.multi_reduction <add>, %29, %cst_15 [0] : vector<256x32xf32> to vector<32xf32>
    %31 = vector.shape_cast %30 : vector<32xf32> to vector<1x32xf32>
    %32 = vector.shape_cast %31 : vector<1x32xf32> to vector<1x1x32xf32>
    %c0_16 = arith.constant 0 : index
    %c0_17 = arith.constant 0 : index
    %c0_18 = arith.constant 0 : index
    %33 = vector.load %arg5[%c0_16, %c0_17, %c0_18] : memref<1x1x32xf32, #tpu.memory_space<vmem>>, vector<1x1x32xf32>
    tpu.vector_store %arg5[%c0_16, %c0_17, %c0_18], %32 {strides = array<i32>} : memref<1x1x32xf32, #tpu.memory_space<vmem>>, vector<1x1x32xf32>,
    return
  }
  func.func @transform_0(%arg0: i32) -> (i32, i32, i32, i32) {
    %c0_i32 = arith.constant 0 : i32
    %c0_i32_0 = arith.constant 0 : i32
    %c0_i32_1 = arith.constant 0 : i32
    %c0_i32_2 = arith.constant 0 : i32
    return %arg0, %c0_i32, %c0_i32_0, %c0_i32_1 : i32, i32, i32, i32
  }
  func.func @transform_1(%arg0: i32) -> (i32, i32, i32) {
    %c0_i32 = arith.constant 0 : i32
    %c0_i32_0 = arith.constant 0 : i32
    %c0_i32_1 = arith.constant 0 : i32
    return %arg0, %c0_i32, %c0_i32_0 : i32, i32, i32
  }
  func.func @transform_2(%arg0: i32) -> (i32, i32) {
    %c0_i32 = arith.constant 0 : i32
    %c0_i32_0 = arith.constant 0 : i32
    %c0_i32_1 = arith.constant 0 : i32
    return %c0_i32, %c0_i32_0 : i32, i32
  }
  func.func @transform_3(%arg0: i32) -> (i32, i32, i32) {
    %c0_i32 = arith.constant 0 : i32
    %c0_i32_0 = arith.constant 0 : i32
    %c0_i32_1 = arith.constant 0 : i32
    return %arg0, %c0_i32, %c0_i32_0 : i32, i32, i32
  }
  func.func @transform_4(%arg0: i32) -> (i32, i32, i32) {
    %c0_i32 = arith.constant 0 : i32
    %c0_i32_0 = arith.constant 0 : i32
    %c0_i32_1 = arith.constant 0 : i32
    return %arg0, %c0_i32, %c0_i32_0 : i32, i32, i32
  }
}

module attributes {stable_mosaic.version = 11 : i64} {
  func.func @_out_kernel(%arg0: i32, %arg1: memref<1x16x17x4xf32, #tpu.memory_space<vmem>>, %arg2: memref<1x17x4xf32, #tpu.memory_space<vmem>>, %arg3: memref<16x32xf32, #tpu.memory_space<vmem>>, %arg4: memref<1x32xf32, #tpu.memory_space<vmem>>, %arg5: memref<1x32xf32, #tpu.memory_space<vmem>>, %arg6: memref<1x256x32xf32, #tpu.memory_space<vmem>>) attributes {dimension_semantics = [#tpu.dimension_semantics<parallel>], iteration_bounds = array<i64: 2>, scalar_prefetch = 0 : i64, scratch_operands = 0 : i64, tpu.core_type = #tpu.core_type<tc>, window_params = [{transform_indices = @transform_0, window_bounds = array<i64: 1, 16, 17, 4>}, {transform_indices = @transform_1, window_bounds = array<i64: 1, 17, 4>}, {pipeline_mode = #tpu.pipeline_mode<synchronous>, transform_indices = @transform_2, window_bounds = array<i64: 16, 32>}, {pipeline_mode = #tpu.pipeline_mode<synchronous>, transform_indices = @transform_3, window_bounds = array<i64: 1, 32>}, {pipeline_mode = #tpu.pipeline_mode<synchronous>, transform_indices = @transform_4, window_bounds = array<i64: 1, 32>}, {transform_indices = @transform_5, window_bounds = array<i64: 1, 256, 32>}]} {
    %c0 = arith.constant 0 : index
    %c0_0 = arith.constant 0 : index
    %c0_1 = arith.constant 0 : index
    %c0_2 = arith.constant 0 : index
    %0 = vector.load %arg1[%c0, %c0_0, %c0_1, %c0_2] : memref<1x16x17x4xf32, #tpu.memory_space<vmem>>, vector<1x16x17x4xf32>
    %1 = vector.shape_cast %0 : vector<1x16x17x4xf32> to vector<16x17x4xf32>
    %2 = vector.extract_strided_slice %1 {offsets = [1, 0, 0], sizes = [15, 17, 4], strides = [1, 1, 1]} : vector<16x17x4xf32> to vector<15x17x4xf32>
    %c0_3 = arith.constant 0 : index
    %c0_4 = arith.constant 0 : index
    %c0_5 = arith.constant 0 : index
    %3 = vector.load %arg2[%c0_3, %c0_4, %c0_5] : memref<1x17x4xf32, #tpu.memory_space<vmem>>, vector<1x17x4xf32>
    %4 = tpu.concatenate %2, %3 in 0 : vector<15x17x4xf32>, vector<1x17x4xf32> -> vector<16x17x4xf32>
    %c0_6 = arith.constant 0 : index
    %c0_7 = arith.constant 0 : index
    %5 = vector.load %arg3[%c0_6, %c0_7] : memref<16x32xf32, #tpu.memory_space<vmem>>, vector<16x32xf32>
    %6 = vector.extract_strided_slice %1 {offsets = [0, 0, 0], sizes = [16, 16, 4], strides = [1, 1, 1]} : vector<16x17x4xf32> to vector<16x16x4xf32>
    %7 = vector.shape_cast %6 : vector<16x16x4xf32> to vector<256x4xf32>
    %8 = vector.extract_strided_slice %5 {offsets = [0, 0], sizes = [4, 32], strides = [1, 1]} : vector<16x32xf32> to vector<4x32xf32>
    %cst = arith.constant dense<0.000000e+00> : vector<256x32xf32>
    %9 = tpu.matmul %7, %8, %cst {dimension_numbers = #tpu.dot_dimension_numbers<[1], [0], [0], [1], [0, 0, 1, 1], [], []>} : vector<256x4xf32>, vector<4x32xf32>, vector<256x32xf32> -> vector<256x32xf32>
    %10 = vector.extract_strided_slice %1 {offsets = [0, 1, 0], sizes = [16, 16, 4], strides = [1, 1, 1]} : vector<16x17x4xf32> to vector<16x16x4xf32>
    %11 = vector.shape_cast %10 : vector<16x16x4xf32> to vector<256x4xf32>
    %12 = vector.extract_strided_slice %5 {offsets = [4, 0], sizes = [4, 32], strides = [1, 1]} : vector<16x32xf32> to vector<4x32xf32>
    %cst_8 = arith.constant dense<0.000000e+00> : vector<256x32xf32>
    %13 = tpu.matmul %11, %12, %cst_8 {dimension_numbers = #tpu.dot_dimension_numbers<[1], [0], [0], [1], [0, 0, 1, 1], [], []>} : vector<256x4xf32>, vector<4x32xf32>, vector<256x32xf32> -> vector<256x32xf32>
    %14 = arith.addf %9, %13 : vector<256x32xf32>
    %15 = vector.extract_strided_slice %4 {offsets = [0, 0, 0], sizes = [16, 16, 4], strides = [1, 1, 1]} : vector<16x17x4xf32> to vector<16x16x4xf32>
    %16 = vector.shape_cast %15 : vector<16x16x4xf32> to vector<256x4xf32>
    %17 = vector.extract_strided_slice %5 {offsets = [8, 0], sizes = [4, 32], strides = [1, 1]} : vector<16x32xf32> to vector<4x32xf32>
    %cst_9 = arith.constant dense<0.000000e+00> : vector<256x32xf32>
    %18 = tpu.matmul %16, %17, %cst_9 {dimension_numbers = #tpu.dot_dimension_numbers<[1], [0], [0], [1], [0, 0, 1, 1], [], []>} : vector<256x4xf32>, vector<4x32xf32>, vector<256x32xf32> -> vector<256x32xf32>
    %19 = arith.addf %14, %18 : vector<256x32xf32>
    %20 = vector.extract_strided_slice %4 {offsets = [0, 1, 0], sizes = [16, 16, 4], strides = [1, 1, 1]} : vector<16x17x4xf32> to vector<16x16x4xf32>
    %21 = vector.shape_cast %20 : vector<16x16x4xf32> to vector<256x4xf32>
    %22 = vector.extract_strided_slice %5 {offsets = [12, 0], sizes = [4, 32], strides = [1, 1]} : vector<16x32xf32> to vector<4x32xf32>
    %cst_10 = arith.constant dense<0.000000e+00> : vector<256x32xf32>
    %23 = tpu.matmul %21, %22, %cst_10 {dimension_numbers = #tpu.dot_dimension_numbers<[1], [0], [0], [1], [0, 0, 1, 1], [], []>} : vector<256x4xf32>, vector<4x32xf32>, vector<256x32xf32> -> vector<256x32xf32>
    %24 = arith.addf %19, %23 : vector<256x32xf32>
    %c0_11 = arith.constant 0 : index
    %c0_12 = arith.constant 0 : index
    %25 = vector.load %arg4[%c0_11, %c0_12] : memref<1x32xf32, #tpu.memory_space<vmem>>, vector<1x32xf32>
    %26 = vector.broadcast %25 : vector<1x32xf32> to vector<256x32xf32>
    %27 = arith.mulf %24, %26 : vector<256x32xf32>
    %c0_13 = arith.constant 0 : index
    %c0_14 = arith.constant 0 : index
    %28 = vector.load %arg5[%c0_13, %c0_14] : memref<1x32xf32, #tpu.memory_space<vmem>>, vector<1x32xf32>
    %29 = vector.broadcast %28 : vector<1x32xf32> to vector<256x32xf32>
    %30 = arith.addf %27, %29 : vector<256x32xf32>
    %cst_15 = arith.constant 0.000000e+00 : f32
    %31 = vector.broadcast %cst_15 : f32 to vector<256x32xf32>
    %32 = arith.cmpf oge, %30, %31 : vector<256x32xf32>
    %cst_16 = arith.constant 0.00999999977 : f32
    %33 = vector.broadcast %cst_16 : f32 to vector<256x32xf32>
    %34 = arith.mulf %33, %30 : vector<256x32xf32>
    %35 = arith.select %32, %30, %34 : vector<256x32xi1>, vector<256x32xf32>
    %36 = vector.shape_cast %35 : vector<256x32xf32> to vector<1x256x32xf32>
    %c0_17 = arith.constant 0 : index
    %c0_18 = arith.constant 0 : index
    %c0_19 = arith.constant 0 : index
    %37 = vector.load %arg6[%c0_17, %c0_18, %c0_19] : memref<1x256x32xf32, #tpu.memory_space<vmem>>, vector<1x256x32xf32>
    tpu.vector_store %arg6[%c0_17, %c0_18, %c0_19], %36 {strides = array<i32>} : memref<1x256x32xf32, #tpu.memory_space<vmem>>, vector<1x256x32xf32>,
    return
  }
  func.func @transform_0(%arg0: i32) -> (i32, i32, i32, i32) {
    %c0_i32 = arith.constant 0 : i32
    %c0_i32_0 = arith.constant 0 : i32
    %c0_i32_1 = arith.constant 0 : i32
    %c0_i32_2 = arith.constant 0 : i32
    return %arg0, %c0_i32, %c0_i32_0, %c0_i32_1 : i32, i32, i32, i32
  }
  func.func @transform_1(%arg0: i32) -> (i32, i32, i32) {
    %c0_i32 = arith.constant 0 : i32
    %c0_i32_0 = arith.constant 0 : i32
    %c0_i32_1 = arith.constant 0 : i32
    return %arg0, %c0_i32, %c0_i32_0 : i32, i32, i32
  }
  func.func @transform_2(%arg0: i32) -> (i32, i32) {
    %c0_i32 = arith.constant 0 : i32
    %c0_i32_0 = arith.constant 0 : i32
    %c0_i32_1 = arith.constant 0 : i32
    return %c0_i32, %c0_i32_0 : i32, i32
  }
  func.func @transform_3(%arg0: i32) -> (i32, i32) {
    %c0_i32 = arith.constant 0 : i32
    %c0_i32_0 = arith.constant 0 : i32
    %c0_i32_1 = arith.constant 0 : i32
    return %c0_i32, %c0_i32_0 : i32, i32
  }
  func.func @transform_4(%arg0: i32) -> (i32, i32) {
    %c0_i32 = arith.constant 0 : i32
    %c0_i32_0 = arith.constant 0 : i32
    %c0_i32_1 = arith.constant 0 : i32
    return %c0_i32, %c0_i32_0 : i32, i32
  }
  func.func @transform_5(%arg0: i32) -> (i32, i32, i32) {
    %c0_i32 = arith.constant 0 : i32
    %c0_i32_0 = arith.constant 0 : i32
    %c0_i32_1 = arith.constant 0 : i32
    return %arg0, %c0_i32, %c0_i32_0 : i32, i32, i32
  }
}

</mosaic_0001>

<bundles_post_ra>
// kernel: tile.18
= control target key start
LH: loop header
LB: loop body
LE: loop exit
PB: predicated region body
PF: predicated region fallthrough
CT: control target
= control target key end

     0   :  { %s22_s0 = inlined_call_operand.vmem [shape: f32[8], index: 0, kind: input, shape index: {}]   ;;  %s23_s1 = inlined_call_operand.vmem [shape: f32[4,8], index: 1, kind: output, shape index: {}]  }
   0x1   :  { %v4_v0 = vld [vmem:[%s22_s0] ss:$0 sm:$0xff] }
   0x2   :  { %5 = vst [vmem:[%s23_s1] sm:$0xf] %v4_v0 }

// kernel: tile.19
= control target key start
LH: loop header
LB: loop body
LE: loop exit
PB: predicated region body
PF: predicated region fallthrough
CT: control target
= control target key end

     0   :  { %vm7_vm0 = vcmask 64512   ;;  %s37_s8 = smov 8   ;;  %s38_s9 = smov 16   ;;  %vm13_vm1 = vcmask 261312   ;;  %vm19_vm2 = vcmask 195712   ;;  %vm25_vm3 = vcmask 130112   ;;  %s55_s0 = inlined_call_operand.vmem [shape: f32[4,8], index: 0, kind: input, shape index: {}]   ;;  %s56_s1 = inlined_call_operand.vmem [shape: f32[1,32], index: 1, kind: output, shape index: {}]  }
   0x1   :  { %v4_v0 = vld [vmem:[%s55_s0] sm:$0xf]  ;;  %s36_s0 = smov 24  }
   0x2   :  { %5 = vst [vmem:[#allocation1] sm:$0xf] %v4_v0 }
   0x9   :  { %v10_v1 = vld [vmem:[#allocation1 + $0x3] sm:$0x1]   ;;  %v22_v2 = vld [vmem:[#allocation1 + $0x1] sm:$0x1]   ;;  %v6_v3 = vld [vmem:[#allocation1] sm:$0x1]  }
   0xa   :  { %11 = vrot.lane.b32.xlu0 %v10_v1, %s36_s0  ;;  %23 = vrot.lane.b32.xlu1 %v22_v2, %s37_s8  ;;  %v16_v4 = vld [vmem:[#allocation1 + $0x2] sm:$0x1]   ;;  %8 = vst.msk [vmem:[#allocation0] sm:$0x1] %vm7_vm0, %v6_v3  }
   0xe   :  { %17 = vrot.lane.b32.xlu0 %v16_v4, %s38_s9 }
  0x7c   :  { %v12_v5 = vpop.permute.xlu0 %11   ;;  %v24_v6 = vpop.permute.xlu1 %23  }
  0x7d   :  { %14 = vst.msk [vmem:[#allocation0] sm:$0x1] %vm13_vm1, %v12_v5  }
  0x80   :  { %v18_v7 = vpop.permute.xlu0 %17  }
  0x81   :  { %20 = vst.msk [vmem:[#allocation0] sm:$0x1] %vm19_vm2, %v18_v7  }
  0x82   :  { %26 = vst.msk [vmem:[#allocation0] sm:$0x1] %vm25_vm3, %v24_v6  }
  0x89   :  { %v30_v8 = vld [vmem:[#allocation0] sm:$0x1] }
  0x8a   :  { %32 = vst [vmem:[%s56_s1] sm:$0x1] %v30_v8 }

// kernel: upsample_block_forward.3
= control target key start
LH: loop header
LB: loop body
LE: loop exit
PB: predicated region body
PF: predicated region fallthrough
CT: control target
= control target key end

     0   :  { %s2445_s18 = smov 0   ;;  %s3126_s0 = inlined_call_operand.vmem [shape: f32[2,16,17,4], index: 0, kind: input, shape index: {}]   ;;  %s3127_s1 = inlined_call_operand.vmem [shape: f32[2,17,4], index: 1, kind: input, shape index: {}]   ;;  %s3128_s2 = inlined_call_operand.vmem [shape: f32[16,32], index: 2, kind: input, shape index: {}]   ;;  %s3129_s3 = inlined_call_operand.vmem [shape: f32[1,32], index: 3, kind: input, shape index: {}]   ;;  %s3130_s4 = inlined_call_operand.vmem [shape: f32[1,32], index: 4, kind: input, shape index: {}]   ;;  %s3131_s5 = inlined_call_operand.vmem [shape: f32[2,256,32], index: 5, kind: output, shape index: {}]  }
   0x1 LB: > { %s1823_s19 = sadd.s32 4294967295, %s2413_s18   ;;  %p1827_p0 = scmp.ge.s32.totalorder %s2413_s18, 1  ;;  %s2413_s18 = sphi %s2445_s18, %s15_s18  }
   0x2   : > { %p197_p1 = scmp.lt.s32.totalorder %s2413_s18, 3 }
   0x4   : > { %p198_p2 = pnand %p1827_p0, %p197_p1 }
   0x6   : > { %201 = sbr.rel (%p198_p2) target bundleno = 372 (0x174), region = 40 }
   0xd   : > { %v297_v0 = vld [vmem:[%s3128_s2 + $0x8] sm:$0xff]  ;;  %vm494_vm0 = vcmask 1043456   ;;  %p230_p3 = scmp.lt.s32.totalorder %s1823_s19, 1  ;;  %v296_v1 = vld [vmem:[%s3128_s2] sm:$0xff]  ;;  %vm429_vm1 = vcmask 31744   ;;  %vm346_vm2 = vcmask 1046528  }
   0xe   : > { %2201 = vmatprep.subr.msk.mxu0 %vm494_vm0, %v297_v0  ;;  %v1285_v2 = vrot.slane %v297_v0, 4  ;;  %v428_v3 = vrot.slane %v296_v1, 4  ;;  %vm1723_vm4 = vcmask 261120  }
   0xf   : > { %2202 = vmatpush3.msk.msra.mxu0 %vm494_vm0, %v297_v0  ;;  %s3155_s19 = smov (!%p230_p3, %s1823_s19), 1 }
  0x10   : > { %2101 = vmatprep.subr.msk.mxu1 %vm494_vm0, %v428_v3  ;;  %2251 = vmatprep.subr.msk.mxu0 %vm494_vm0, %v1285_v2  ;;  %s2397_s24 = smul.u32 384, %s3155_s19  ;;  %s1968_s11 = sshll.u32 %s3155_s19, 8 }
  0x11   : > { %2102 = vmatpush3.msk.msra.mxu1 %vm494_vm0, %v428_v3  ;;  %s2398_s28 = smul.u32 24, %s3155_s19  ;;  %s2997_s14 = scalar_lea.vmem %s3131_s5, %s1968_s11 }
  0x12   : > { %2151 = vmatprep.subr.msk.mxu1 %vm494_vm0, %v296_v1  ;;  %s2471_s27 = scalar_lea.vmem %s3126_s0, %s2397_s24 }
  0x13   : > { %v2474_v4 = vld [vmem:[%s2471_s27 + $0x18] sm:$0xff]  ;;  %v2477_v5 = vld [vmem:[%s2471_s27 + $0x20] sm:$0xff]  ;;  %v2487_v9 = vld [vmem:[%s2471_s27 + $0x8] sm:$0xff]  ;;  %s2589_s6 = scalar_lea.vmem %s3127_s1, %s2398_s28 }
  0x14   : > { %v2480_v6 = vld [vmem:[%s2471_s27] sm:$0xff]  ;;  %v352_v7 = vrot.slane %v2474_v4, 1  ;;  %2203 = vmatprep.mubr.msk.f32.mxu0 %vm429_vm1, %v2474_v4  ;;  %v353_v8 = vrot.slane %v2477_v5, 1  ;;  %v247_v11 = vld [vmem:[%s2471_s27 + $0x10] sm:$0x1]  ;;  %v348_v12 = vrot.slane %v2487_v9, 1 }
  0x15   : > { %v347_v10 = vrot.slane %v2480_v6, 1  ;;  %2204 = vmatmul.mubr.msk.f32.vlgmr.msra.gmra.mrb[0].mxu0 %vm429_vm1, %v2477_v5  ;;  %v350_v13 = vrot.slane %v247_v11, 1  ;;  %v2495_v14 = vld [vmem:[%s2471_s27 + $0x30] sm:$0xff]  ;;  %v250_v15 = vld [vmem:[%s2471_s27 + $0x28] sm:$0x1]  ;;  %v2503_v17 = vld [vmem:[%s2471_s27 + $0x38] sm:$0xff] }
  0x16   : > { %v357_v16 = vrot.slane %v2495_v14, 1  ;;  %2206 = vmatprep.mubr.msk.f32.mxu0 %vm429_vm1, %v2495_v14  ;;  %2252 = vmatpush3.msk.msra.mxu0 %vm494_vm0, %v1285_v2  ;;  %v355_v18 = vrot.slane %v250_v15, 1  ;;  %v358_v21 = vrot.slane %v2503_v17, 1  ;;  %v2509_v22 = vsel %vm346_vm2, %v352_v7, %v353_v8  ;;  %v253_v23 = vld [vmem:[%s2471_s27 + $0x40] sm:$0x1]  ;;  %v2514_v24 = vld [vmem:[%s2471_s27 + $0x48] sm:$0xff] }
  0x17   : > { %v349_v19 = vsel %vm346_vm2, %v347_v10, %v348_v12  ;;  %v351_v20 = vsel %vm346_vm2, %v348_v12, %v350_v13  ;;  %v2526_v26 = vld [vmem:[%s2471_s27 + $0x50] sm:$0xff]  ;;  %v360_v27 = vrot.slane %v253_v23, 1  ;;  %v362_v28 = vrot.slane %v2514_v24, 1  ;;  %v2536_v31 = vld [vmem:[%s2471_s27 + $0x60] sm:$0xff]  ;;  %v256_v32 = vld [vmem:[%s2471_s27 + $0x58] sm:$0x1] }
  0x18   : > { %2103 = vmatprep.mubr.msk.f32.mxu1 %vm429_vm1, %v349_v19  ;;  %v2523_v25 = vsel %vm346_vm2, %v353_v8, %v355_v18  ;;  %v363_v29 = vrot.slane %v2526_v26, 1  ;;  %v2533_v30 = vsel %vm346_vm2, %v357_v16, %v358_v21  ;;  %v2551_v34 = vld [vmem:[%s2471_s27 + $0x68] sm:$0xff]  ;;  %v365_v35 = vrot.slane %v256_v32, 1  ;;  %v2559_v39 = vld [vmem:[%s2471_s27 + $0x78] sm:$0xff]  ;;  %v259_v40 = vld [vmem:[%s2471_s27 + $0x70] sm:$0x1] }
  0x19   : > { %2104 = vmatmul.mubr.msk.f32.vlgmr.msra.gmra.mrb[0].mxu1 %vm429_vm1, %v351_v20  ;;  %2207 = vmatmul.mubr.msk.f32.gmra.mrb[2].mxu0 %vm429_vm1, %v2503_v17  ;;  %v2546_v33 = vsel %vm346_vm2, %v358_v21, %v360_v27  ;;  %v367_v36 = vrot.slane %v2536_v31, 1  ;;  %v368_v37 = vrot.slane %v2551_v34, 1  ;;  %v2575_v42 = vld [vmem:[%s2471_s27 + $0x80] sm:$0xff]  ;;  %v370_v43 = vrot.slane %v259_v40, 1  ;;  %v2583_v47 = vld [vmem:[%s2471_s27 + $0x90] sm:$0xff]  ;;  %v2604_v51 = vld [vmem:[%s2471_s27 + $0x98] sm:$0xff] }
  0x1a   : > { %2152 = vmatpush3.msk.msra.mxu1 %vm494_vm0, %v296_v1  ;;  %2106 = vmatprep.mubr.msk.f32.mxu1 %vm429_vm1, %v2509_v22  ;;  %v2556_v38 = vsel %vm346_vm2, %v362_v28, %v363_v29  ;;  %v2570_v41 = vsel %vm346_vm2, %v363_v29, %v365_v35  ;;  %v372_v44 = vrot.slane %v2559_v39, 1  ;;  %v373_v45 = vrot.slane %v2575_v42, 1  ;;  %v262_v48 = vld [vmem:[%s2471_s27 + $0x88] sm:$0x1]  ;;  %v295_v49 = vld [vmem:[%s2589_s6 + $0x10] sm:$0x1] }
  0x1b   : > { %2209 = vmatprep.mubr.msk.f32.mxu0 %vm429_vm1, %v2514_v24  ;;  %v2580_v46 = vsel %vm346_vm2, %v367_v36, %v368_v37  ;;  %v2599_v50 = vsel %vm346_vm2, %v368_v37, %v370_v43  ;;  %v375_v52 = vrot.slane %v262_v48, 1  ;;  %v377_v53 = vrot.slane %v2583_v47, 1  ;;  %v2612_v56 = vld [vmem:[%s2471_s27 + $0xa8] sm:$0xff]  ;;  %v265_v57 = vld [vmem:[%s2471_s27 + $0xa0] sm:$0x1]  ;;  %v2631_v62 = vld [vmem:[%s2471_s27 + $0xb0] sm:$0xff] }
  0x1c   : > { %v378_v54 = vrot.slane %v2604_v51, 1  ;;  %v2609_v55 = vsel %vm346_vm2, %v372_v44, %v373_v45  ;;  %v2616_v58 = vld [vmem:[%s2589_s6 + $0x8] sm:$0xff]  ;;  %v1283_v60 = vrot.slane %v295_v49, 1  ;;  %v380_v63 = vrot.slane %v265_v57, 1  ;;  %v2644_v7 = vld [vmem:[%s2471_s27 + $0xc0] sm:$0xff]  ;;  %v2667_v18 = vld [vmem:[%s2471_s27 + $0xd8] sm:$0xff] }
  0x1d   : > { %2107 = vmatmul.mubr.msk.f32.gmra.mrb[2].mxu1 %vm429_vm1, %v2523_v25  ;;  %2210 = vmatmul.mubr.msk.f32.gmra.mrb[4].mxu0 %vm429_vm1, %v2526_v26  ;;  %v3132_v59 = vrot.slane %v2616_v58, 1  ;;  %v2626_v61 = vsel %vm346_vm2, %v373_v45, %v375_v52  ;;  %v382_v1 = vrot.slane %v2612_v56, 1  ;;  %v383_v2 = vrot.slane %v2631_v62, 1  ;;  %v268_v8 = vld [vmem:[%s2471_s27 + $0xb8] sm:$0x1]  ;;  %v2659_v11 = vld [vmem:[%s2471_s27 + $0xc8] sm:$0xff] }
  0x1e   : > { %2109 = vmatprep.mubr.msk.f32.mxu1 %vm429_vm1, %v2533_v30  ;;  %2212 = vmatprep.mubr.msk.f32.mxu0 %vm429_vm1, %v2536_v31  ;;  %v2641_v3 = vsel %vm346_vm2, %v377_v53, %v378_v54  ;;  %v2654_v10 = vsel %vm346_vm2, %v378_v54, %v380_v63  ;;  %v385_v12 = vrot.slane %v268_v8, 1  ;;  %v387_v13 = vrot.slane %v2644_v7, 1  ;;  %v271_v19 = vld [vmem:[%s2471_s27 + $0xd0] sm:$0x1]  ;;  %v2682_v21 = vld [vmem:[%s2471_s27 + $0xe0] sm:$0xff]  ;;  %v2705_v37 = vld [vmem:[%s2471_s27 + $0xf8] sm:$0xff] }
  0x1f   : > { %v2636_v0 = vsel %vm346_vm2, %v3132_v59, %v1283_v60  ;;  %v388_v15 = vrot.slane %v2659_v11, 1  ;;  %v2664_v16 = vsel %vm346_vm2, %v382_v1, %v383_v2  ;;  %v390_v23 = vrot.slane %v271_v19, 1  ;;  %v2690_v32 = vld [vmem:[%s2471_s27 + $0xf0] sm:$0xff]  ;;  %v274_v35 = vld [vmem:[%s2471_s27 + $0xe8] sm:$0x1]  ;;  %v2736_v1 = vld [vmem:[%s2471_s27 + $0x120] sm:$0xff] }
  0x20   : > { %3139 = vst [vmem:[#allocation2_spill] sm:$0xff] %v2636_v0  ;;  %v2677_v20 = vsel %vm346_vm2, %v383_v2, %v385_v12  ;;  %v392_v27 = vrot.slane %v2667_v18, 1  ;;  %v393_v28 = vrot.slane %v2682_v21, 1  ;;  %v395_v40 = vrot.slane %v274_v35, 1  ;;  %v2713_v48 = vld [vmem:[%s2471_s27 + $0x108] sm:$0xff]  ;;  %v2728_v53 = vld [vmem:[%s2471_s27 + $0x110] sm:$0xff] }
  0x21   : > { %2110 = vmatmul.mubr.msk.f32.gmra.mrb[4].mxu1 %vm429_vm1, %v2546_v33  ;;  %2213 = vmatmul.mubr.msk.f32.gmra.mrb[6].mxu0 %vm429_vm1, %v2551_v34  ;;  %v2687_v29 = vsel %vm346_vm2, %v387_v13, %v388_v15  ;;  %v2700_v36 = vsel %vm346_vm2, %v388_v15, %v390_v23  ;;  %v397_v43 = vrot.slane %v2690_v32, 1  ;;  %v398_v44 = vrot.slane %v2705_v37, 1  ;;  %v277_v49 = vld [vmem:[%s2471_s27 + $0x100] sm:$0x1]  ;;  %3140 = vst [vmem:[#allocation3_spill] sm:$0xff] %v2736_v1  ;;  %v2751_v12 = vld [vmem:[%s2471_s27 + $0x128] sm:$0xff] }
  0x22   : > { %2112 = vmatprep.mubr.msk.f32.mxu1 %vm429_vm1, %v2556_v38  ;;  %2215 = vmatprep.mubr.msk.f32.mxu0 %vm429_vm1, %v2559_v39  ;;  %v2710_v45 = vsel %vm346_vm2, %v392_v27, %v393_v28  ;;  %v2723_v52 = vsel %vm346_vm2, %v393_v28, %v395_v40  ;;  %v400_v54 = vrot.slane %v277_v49, 1  ;;  %v402_v57 = vrot.slane %v2713_v48, 1  ;;  %v280_v2 = vld [vmem:[%s2471_s27 + $0x118] sm:$0x1]  ;;  %3141 = vst [vmem:[#allocation4_spill] sm:$0xff] %v2751_v12  ;;  %v2774_v40 = vld [vmem:[%s2471_s27 + $0x140] sm:$0xff] }
  0x23   : > { %v403_v60 = vrot.slane %v2728_v53, 1  ;;  %v2733_v63 = vsel %vm346_vm2, %v397_v43, %v398_v44  ;;  %v405_v13 = vrot.slane %v280_v2, 1  ;;  %v407_v15 = vrot.slane %v2736_v1, 1  ;;  %v2759_v27 = vld [vmem:[%s2471_s27 + $0x138] sm:$0xff]  ;;  %v283_v28 = vld [vmem:[%s2471_s27 + $0x130] sm:$0x1] }
  0x24   : > { %v2746_v8 = vsel %vm346_vm2, %v398_v44, %v400_v54  ;;  %v408_v19 = vrot.slane %v2751_v12, 1  ;;  %3142 = vst [vmem:[#allocation5_spill] sm:$0xff] %v2759_v27  ;;  %3143 = vst [vmem:[#allocation6_spill] sm:$0xff] %v2774_v40  ;;  %v410_v43 = vrot.slane %v283_v28, 1  ;;  %v412_v44 = vrot.slane %v2759_v27, 1 }
  0x25   : > { %2113 = vmatmul.mubr.msk.f32.gmra.mrb[6].mxu1 %vm429_vm1, %v2570_v41  ;;  %2216 = vmatmul.mubr.msk.f32.gmra.mrb[8].mxu0 %vm429_vm1, %v2575_v42  ;;  %v2756_v23 = vsel %vm346_vm2, %v402_v57, %v403_v60  ;;  %v2769_v35 = vsel %vm346_vm2, %v403_v60, %v405_v13  ;;  %v413_v49 = vrot.slane %v2774_v40, 1  ;;  %v2782_v57 = vld [vmem:[%s2471_s27 + $0x150] sm:$0xff]  ;;  %v286_v2 = vld [vmem:[%s2471_s27 + $0x148] sm:$0x1]  ;;  %v2797_v13 = vld [vmem:[%s2471_s27 + $0x158] sm:$0xff] }
  0x26   : > { %2115 = vmatprep.mubr.msk.f32.mxu1 %vm429_vm1, %v2580_v46  ;;  %2218 = vmatprep.mubr.msk.f32.mxu0 %vm429_vm1, %v2583_v47  ;;  %v2779_v54 = vsel %vm346_vm2, %v407_v15, %v408_v19  ;;  %3144 = vst [vmem:[#allocation7_spill] sm:$0xff] %v2782_v57  ;;  %v2792_v60 = vsel %vm346_vm2, %v408_v19, %v410_v43  ;;  %3145 = vst [vmem:[#allocation8_spill] sm:$0xff] %v2797_v13  ;;  %v415_v15 = vrot.slane %v286_v2, 1  ;;  %v2820_v43 = vld [vmem:[%s2471_s27 + $0x170] sm:$0xff] }
  0x27   : > { %v417_v28 = vrot.slane %v2782_v57, 1  ;;  %v418_v59 = vrot.slane %v2797_v13, 1  ;;  %v2802_v0 = vsel %vm346_vm2, %v412_v44, %v413_v49 }
  0x28   : > { %v2815_v19 = vsel %vm346_vm2, %v413_v49, %v415_v15 }
  0x29   : > { %2116 = vmatmul.mubr.msk.f32.gmra.mrb[8].mxu1 %vm429_vm1, %v2599_v50  ;;  %2219 = vmatmul.mubr.msk.f32.gmra.mrb[10].mxu0 %vm429_vm1, %v2604_v51 }
  0x2a   : > { %2118 = vmatprep.mubr.msk.f32.mxu1 %vm429_vm1, %v2609_v55  ;;  %2221 = vmatprep.mubr.msk.f32.mxu0 %vm429_vm1, %v2612_v56 }
  0x2d   : > { %2119 = vmatmul.mubr.msk.f32.gmra.mrb[10].mxu1 %vm429_vm1, %v2626_v61  ;;  %2222 = vmatmul.mubr.msk.f32.gmra.mrb[12].mxu0 %vm429_vm1, %v2631_v62 }
  0x2e   : > { %2121 = vmatprep.mubr.msk.f32.mxu1 %vm429_vm1, %v2641_v3  ;;  %2224 = vmatprep.mubr.msk.f32.mxu0 %vm429_vm1, %v2644_v7 }
  0x31   : > { %2122 = vmatmul.mubr.msk.f32.gmra.mrb[12].mxu1 %vm429_vm1, %v2654_v10  ;;  %2225 = vmatmul.mubr.msk.f32.gmra.mrb[14].mxu0 %vm429_vm1, %v2659_v11 }
  0x32   : > { %2124 = vmatprep.mubr.msk.f32.mxu1 %vm429_vm1, %v2664_v16  ;;  %2227 = vmatprep.mubr.msk.f32.mxu0 %vm429_vm1, %v2667_v18 }
  0x35   : > { %2125 = vmatmul.mubr.msk.f32.gmra.mrb[14].mxu1 %vm429_vm1, %v2677_v20  ;;  %2228 = vmatmul.mubr.msk.f32.gmra.mrb[16].mxu0 %vm429_vm1, %v2682_v21 }
  0x36   : > { %2127 = vmatprep.mubr.msk.f32.mxu1 %vm429_vm1, %v2687_v29  ;;  %2230 = vmatprep.mubr.msk.f32.mxu0 %vm429_vm1, %v2690_v32 }
  0x39   : > { %2128 = vmatmul.mubr.msk.f32.gmra.mrb[16].mxu1 %vm429_vm1, %v2700_v36  ;;  %2231 = vmatmul.mubr.msk.f32.gmra.mrb[18].mxu0 %vm429_vm1, %v2705_v37 }
  0x3a   : > { %2130 = vmatprep.mubr.msk.f32.mxu1 %vm429_vm1, %v2710_v45  ;;  %2233 = vmatprep.mubr.msk.f32.mxu0 %vm429_vm1, %v2713_v48 }
  0x3d   : > { %2131 = vmatmul.mubr.msk.f32.gmra.mrb[18].mxu1 %vm429_vm1, %v2723_v52  ;;  %2234 = vmatmul.mubr.msk.f32.gmra.mrb[20].mxu0 %vm429_vm1, %v2728_v53 }
  0x3e   : > { %2133 = vmatprep.mubr.msk.f32.mxu1 %vm429_vm1, %v2733_v63  ;;  %2236 = vmatprep.mubr.msk.f32.mxu0 %vm429_vm1, %v2736_v1  ;;  %v292_v1 = vld [vmem:[%s2471_s27 + $0x178] sm:$0x1] }
  0x3f   : > { %v425_v49 = vrot.slane %v292_v1, 1 }
  0x41   : > { %2134 = vmatmul.mubr.msk.f32.gmra.mrb[20].mxu1 %vm429_vm1, %v2746_v8  ;;  %2237 = vmatmul.mubr.msk.f32.gmra.mrb[22].mxu0 %vm429_vm1, %v2751_v12  ;;  %v2825_v12 = vsel %vm346_vm2, %v417_v28, %v418_v59 }
  0x42   : > { %2136 = vmatprep.mubr.msk.f32.mxu1 %vm429_vm1, %v2756_v23  ;;  %2239 = vmatprep.mubr.msk.f32.mxu0 %vm429_vm1, %v2759_v27  ;;  %v289_v27 = vld [vmem:[%s2471_s27 + $0x160] sm:$0x1] }
  0x43   : > { %v420_v44 = vrot.slane %v289_v27, 1 }
  0x45   : > { %2137 = vmatmul.mubr.msk.f32.gmra.mrb[22].mxu1 %vm429_vm1, %v2769_v35  ;;  %2240 = vmatmul.mubr.msk.f32.gmra.mrb[24].mxu0 %vm429_vm1, %v2774_v40  ;;  %v2805_v40 = vld [vmem:[%s2471_s27 + $0x168] sm:$0xff]  ;;  %v2838_v27 = vsel %vm346_vm2, %v418_v59, %v420_v44 }
  0x46   : > { %2139 = vmatprep.mubr.msk.f32.mxu1 %vm429_vm1, %v2779_v54  ;;  %2242 = vmatprep.mubr.msk.f32.mxu0 %vm429_vm1, %v2782_v57  ;;  %v422_v2 = vrot.slane %v2805_v40, 1  ;;  %v423_v57 = vrot.slane %v2820_v43, 1 }
  0x48   : > { %v424_v15 = vsel %vm346_vm2, %v422_v2, %v423_v57  ;;  %v426_v28 = vsel %vm346_vm2, %v423_v57, %v425_v49 }
  0x49   : > { %2140 = vmatmul.mubr.msk.f32.gmra.mrb[24].mxu1 %vm429_vm1, %v2792_v60  ;;  %2243 = vmatmul.mubr.msk.f32.gmra.mrb[26].mxu0 %vm429_vm1, %v2797_v13  ;;  %v2828_v13 = vld [vmem:[%s2589_s6] sm:$0xff] }
  0x4a   : > { %2142 = vmatprep.mubr.msk.f32.mxu1 %vm429_vm1, %v2802_v0  ;;  %2245 = vmatprep.mubr.msk.f32.mxu0 %vm429_vm1, %v2805_v40 }
  0x4d   : > { %2143 = vmatmul.mubr.msk.f32.gmra.mrb[26].mxu1 %vm429_vm1, %v2815_v19  ;;  %2246 = vmatmul.mubr.msk.f32.gmra.mrb[28].mxu0 %vm429_vm1, %v2820_v43 }
  0x4e   : > { %2145 = vmatprep.mubr.msk.f32.mxu1 %vm429_vm1, %v2825_v12  ;;  %2248 = vmatprep.mubr.msk.f32.mxu0 %vm429_vm1, %v2828_v13 }
  0x51   : > { %2146 = vmatmul.mubr.msk.f32.gmra.mrb[28].mxu1 %vm429_vm1, %v2838_v27  ;;  %2249 = vmatmul.mubr.msk.f32.gmra.mrb[30].mxu0 %vm429_vm1, %v2616_v58 }
  0x52   : > { %2148 = vmatprep.mubr.msk.f32.mxu1 %vm429_vm1, %v424_v15  ;;  %2253 = vmatprep.mubr.msk.f32.mxu0 %vm429_vm1, %v2509_v22  ;;  %v3150_v22 = vld [vmem:[#allocation6_spill] sm:$0xff] }
  0x55   : > { %2149 = vmatmul.mubr.msk.f32.gmra.mrb[30].mxu1 %vm429_vm1, %v426_v28  ;;  %2254 = vmatmul.mubr.msk.f32.vlgmr.msra.gmra.mrb[0].mxu0 %vm429_vm1, %v2523_v25  ;;  %v3152_v25 = vld [vmem:[#allocation8_spill] sm:$0xff] }
  0x56   : > { %2153 = vmatprep.mubr.msk.f32.mxu1 %vm429_vm1, %v2480_v6  ;;  %2256 = vmatprep.mubr.msk.f32.mxu0 %vm429_vm1, %v2533_v30  ;;  %v3147_v6 = vld [vmem:[#allocation4_spill] sm:$0xff] }
  0x59   : > { %2154 = vmatmul.mubr.msk.f32.vlgmr.msra.gmra.mrb[0].mxu1 %vm429_vm1, %v2487_v9  ;;  %2257 = vmatmul.mubr.msk.f32.gmra.mrb[2].mxu0 %vm429_vm1, %v2546_v33  ;;  %v3148_v9 = vld [vmem:[#allocation5_spill] sm:$0xff] }
  0x5a   : > { %2156 = vmatprep.mubr.msk.f32.mxu1 %vm429_vm1, %v2474_v4  ;;  %2259 = vmatprep.mubr.msk.f32.mxu0 %vm429_vm1, %v2556_v38  ;;  %v3146_v4 = vld [vmem:[#allocation3_spill] sm:$0xff] }
  0x5d   : > { %2157 = vmatmul.mubr.msk.f32.gmra.mrb[2].mxu1 %vm429_vm1, %v2477_v5  ;;  %2260 = vmatmul.mubr.msk.f32.gmra.mrb[4].mxu0 %vm429_vm1, %v2570_v41  ;;  %v1280_v5 = vrot.slane %v2828_v13, 1 }
  0x5e   : > { %2159 = vmatprep.mubr.msk.f32.mxu1 %vm429_vm1, %v2495_v14  ;;  %2262 = vmatprep.mubr.msk.f32.mxu0 %vm429_vm1, %v2580_v46  ;;  %v3149_v14 = vrot.slane %v2616_v58, 1  ;;  %v2987_v46 = vld [vmem:[%s3130_s4] ss:$0 sm:$0xff] }
  0x61   : > { %2160 = vmatmul.mubr.msk.f32.gmra.mrb[4].mxu1 %vm429_vm1, %v2503_v17  ;;  %2263 = vmatmul.mubr.msk.f32.gmra.mrb[6].mxu0 %vm429_vm1, %v2599_v50  ;;  %v1282_v17 = vsel %vm346_vm2, %v1280_v5, %v3149_v14 }
  0x62   : > { %2162 = vmatprep.mubr.msk.f32.mxu1 %vm429_vm1, %v2514_v24  ;;  %2265 = vmatprep.mubr.msk.f32.mxu0 %vm429_vm1, %v2609_v55  ;;  %v3151_v24 = vld [vmem:[#allocation7_spill] sm:$0xff] }
  0x65   : > { %2163 = vmatmul.mubr.msk.f32.gmra.mrb[6].mxu1 %vm429_vm1, %v2526_v26  ;;  %2266 = vmatmul.mubr.msk.f32.gmra.mrb[8].mxu0 %vm429_vm1, %v2626_v61  ;;  %v3153_v26 = vld [vmem:[#allocation2_spill] sm:$0xff] }
  0x66   : > { %2165 = vmatprep.mubr.msk.f32.mxu1 %vm429_vm1, %v2536_v31  ;;  %2268 = vmatprep.mubr.msk.f32.mxu0 %vm429_vm1, %v2641_v3 }
  0x69   : > { %2166 = vmatmul.mubr.msk.f32.gmra.mrb[8].mxu1 %vm429_vm1, %v2551_v34  ;;  %2269 = vmatmul.mubr.msk.f32.gmra.mrb[10].mxu0 %vm429_vm1, %v2654_v10  ;;  %v2982_v34 = vld [vmem:[%s3129_s3] ss:$0 sm:$0xff] }
  0x6a   : > { %2168 = vmatprep.mubr.msk.f32.mxu1 %vm429_vm1, %v2559_v39  ;;  %2271 = vmatprep.mubr.msk.f32.mxu0 %vm429_vm1, %v2664_v16 }
  0x6d   : > { %2169 = vmatmul.mubr.msk.f32.gmra.mrb[10].mxu1 %vm429_vm1, %v2575_v42  ;;  %2272 = vmatmul.mubr.msk.f32.gmra.mrb[12].mxu0 %vm429_vm1, %v2677_v20 }
  0x6e   : > { %2171 = vmatprep.mubr.msk.f32.mxu1 %vm429_vm1, %v2583_v47  ;;  %2274 = vmatprep.mubr.msk.f32.mxu0 %vm429_vm1, %v2687_v29 }
  0x71   : > { %2172 = vmatmul.mubr.msk.f32.gmra.mrb[12].mxu1 %vm429_vm1, %v2604_v51  ;;  %2275 = vmatmul.mubr.msk.f32.gmra.mrb[14].mxu0 %vm429_vm1, %v2700_v36 }
  0x72   : > { %2174 = vmatprep.mubr.msk.f32.mxu1 %vm429_vm1, %v2612_v56  ;;  %2277 = vmatprep.mubr.msk.f32.mxu0 %vm429_vm1, %v2710_v45 }
  0x75   : > { %2175 = vmatmul.mubr.msk.f32.gmra.mrb[14].mxu1 %vm429_vm1, %v2631_v62  ;;  %2278 = vmatmul.mubr.msk.f32.gmra.mrb[16].mxu0 %vm429_vm1, %v2723_v52 }
  0x76   : > { %2177 = vmatprep.mubr.msk.f32.mxu1 %vm429_vm1, %v2644_v7  ;;  %2280 = vmatprep.mubr.msk.f32.mxu0 %vm429_vm1, %v2733_v63 }
  0x79   : > { %2178 = vmatmul.mubr.msk.f32.gmra.mrb[16].mxu1 %vm429_vm1, %v2659_v11  ;;  %2281 = vmatmul.mubr.msk.f32.gmra.mrb[18].mxu0 %vm429_vm1, %v2746_v8 }
  0x7a   : > { %2180 = vmatprep.mubr.msk.f32.mxu1 %vm429_vm1, %v2667_v18  ;;  %2283 = vmatprep.mubr.msk.f32.mxu0 %vm429_vm1, %v2756_v23 }
  0x7d   : > { %2181 = vmatmul.mubr.msk.f32.gmra.mrb[18].mxu1 %vm429_vm1, %v2682_v21  ;;  %2284 = vmatmul.mubr.msk.f32.gmra.mrb[20].mxu0 %vm429_vm1, %v2769_v35 }
  0x7e   : > { %2183 = vmatprep.mubr.msk.f32.mxu1 %vm429_vm1, %v2690_v32  ;;  %2286 = vmatprep.mubr.msk.f32.mxu0 %vm429_vm1, %v2779_v54 }
  0x81   : > { %2184 = vmatmul.mubr.msk.f32.gmra.mrb[20].mxu1 %vm429_vm1, %v2705_v37  ;;  %2287 = vmatmul.mubr.msk.f32.gmra.mrb[22].mxu0 %vm429_vm1, %v2792_v60 }
  0x82   : > { %2186 = vmatprep.mubr.msk.f32.mxu1 %vm429_vm1, %v2713_v48  ;;  %2289 = vmatprep.mubr.msk.f32.mxu0 %vm429_vm1, %v2802_v0 }
  0x85   : > { %2187 = vmatmul.mubr.msk.f32.gmra.mrb[22].mxu1 %vm429_vm1, %v2728_v53  ;;  %2290 = vmatmul.mubr.msk.f32.gmra.mrb[24].mxu0 %vm429_vm1, %v2815_v19 }
  0x86   : > { %2189 = vmatprep.mubr.msk.f32.mxu1 %vm429_vm1, %v3146_v4  ;;  %2292 = vmatprep.mubr.msk.f32.mxu0 %vm429_vm1, %v2825_v12 }
  0x89   : > { %2190 = vmatmul.mubr.msk.f32.gmra.mrb[24].mxu1 %vm429_vm1, %v3147_v6  ;;  %2293 = vmatmul.mubr.msk.f32.gmra.mrb[26].mxu0 %vm429_vm1, %v2838_v27 }
  0x8a   : > { %2192 = vmatprep.mubr.msk.f32.mxu1 %vm429_vm1, %v3148_v9  ;;  %2295 = vmatprep.mubr.msk.f32.mxu0 %vm429_vm1, %v424_v15 }
  0x8d   : > { %2193 = vmatmul.mubr.msk.f32.gmra.mrb[26].mxu1 %vm429_vm1, %v3150_v22  ;;  %2296 = vmatmul.mubr.msk.f32.gmra.mrb[28].mxu0 %vm429_vm1, %v426_v28 }
  0x8e   : > { %2195 = vmatprep.mubr.msk.f32.mxu1 %vm429_vm1, %v3151_v24  ;;  %2298 = vmatprep.mubr.msk.f32.mxu0 %vm429_vm1, %v1282_v17 }
  0x91   : > { %2196 = vmatmul.mubr.msk.f32.gmra.mrb[28].mxu1 %vm429_vm1, %v3152_v25  ;;  %2299 = vmatmul.mubr.msk.f32.gmra.mrb[30].mxu0 %vm429_vm1, %v3153_v26 }
  0x92   : > { %2198 = vmatprep.mubr.msk.f32.mxu1 %vm429_vm1, %v2805_v40 }
  0x95   : > { %2199 = vmatmul.mubr.msk.f32.gmra.mrb[30].mxu1 %vm429_vm1, %v2820_v43 }
 0x128   : > { %v2255_v30 = vpop.f32.mrb[0].mxu0 }
 0x129   : > { %v1358_v31 = vpop.f32.mrb[1].mxu0 }
 0x12c   : > { %v2155_v33 = vpop.f32.mrb[0].mxu1  ;;  %v2258_v38 = vpop.f32.mrb[2].mxu0 }
 0x12d   : > { %v2301_v39 = vadd.f32 %v2255_v30, %v2155_v33  ;;  %v854_v41 = vpop.f32.mrb[1].mxu1  ;;  %v1368_v42 = vpop.f32.mrb[3].mxu0 }
 0x12e   : > { %v2302_v47 = vadd.f32 %v1358_v31, %v854_v41 }
 0x12f   : > { %v1557_v50 = vmul.f32 %v2301_v39, %v2982_v34 }
 0x130   : > { %v1556_v51 = vmul.f32 %v2302_v47, %v2982_v34  ;;  %v2158_v55 = vpop.f32.mrb[2].mxu1  ;;  %v2261_v56 = vpop.f32.mrb[4].mxu0 }
 0x131   : > { %v1596_v58 = vadd.f32 %v2987_v46, %v1557_v50  ;;  %v2303_v59 = vadd.f32 %v2258_v38, %v2158_v55  ;;  %v864_v61 = vpop.f32.mrb[3].mxu1  ;;  %v1378_v62 = vpop.f32.mrb[5].mxu0 }
 0x132   : > { %v1595_v0 = vadd.f32 %v2987_v46, %v1556_v51  ;;  %v2304_v3 = vadd.f32 %v1368_v42, %v864_v61 }
 0x133   : > { %vm1628_vm3 = vcmp.ge.f32.partialorder %v1596_v58, 0.0  ;;  %v1660_v7 = vmul.f32 0.01, %v1596_v58  ;;  %v1559_v10 = vmul.f32 %v2303_v59, %v2982_v34 }
 0x134   : > { %vm1627_vm5 = vcmp.ge.f32.partialorder %v1595_v0, 0.0  ;;  %v1659_v11 = vmul.f32 0.01, %v1595_v0  ;;  %v1558_v16 = vmul.f32 %v2304_v3, %v2982_v34  ;;  %v2161_v18 = vpop.f32.mrb[4].mxu1  ;;  %v2264_v20 = vpop.f32.mrb[6].mxu0 }
 0x135   : > { %v1692_v21 = vsel %vm1628_vm3, %v1596_v58, %v1660_v7  ;;  %v1598_v29 = vadd.f32 %v2987_v46, %v1559_v10  ;;  %v2305_v32 = vadd.f32 %v2261_v56, %v2161_v18  ;;  %v874_v36 = vpop.f32.mrb[5].mxu1  ;;  %v1388_v37 = vpop.f32.mrb[7].mxu0 }
 0x136   : > { %1725 = vst.msk [vmem:[%s2997_s14 + $0x8] sm:$0xff] %vm1723_vm4, %v1692_v21  ;;  %v1691_v45 = vsel %vm1627_vm5, %v1595_v0, %v1659_v11  ;;  %v1597_v48 = vadd.f32 %v2987_v46, %v1558_v16  ;;  %v2306_v52 = vadd.f32 %v1378_v62, %v874_v36 }
 0x137   : > { %1724 = vst.msk [vmem:[%s2997_s14] sm:$0xff] %vm1723_vm4, %v1691_v45  ;;  %vm1630_vm6 = vcmp.ge.f32.partialorder %v1598_v29, 0.0  ;;  %v1662_v53 = vmul.f32 0.01, %v1598_v29  ;;  %v1561_v63 = vmul.f32 %v2305_v32, %v2982_v34 }
 0x138   : > { %vm1629_vm7 = vcmp.ge.f32.partialorder %v1597_v48, 0.0  ;;  %v1661_v1 = vmul.f32 0.01, %v1597_v48  ;;  %v1560_v8 = vmul.f32 %v2306_v52, %v2982_v34  ;;  %v2164_v12 = vpop.f32.mrb[6].mxu1  ;;  %v2267_v23 = vpop.f32.mrb[8].mxu0 }
 0x139   : > { %v1694_v35 = vsel %vm1630_vm6, %v1598_v29, %v1662_v53  ;;  %v1600_v40 = vadd.f32 %v2987_v46, %v1561_v63  ;;  %v2307_v54 = vadd.f32 %v2264_v20, %v2164_v12  ;;  %v884_v57 = vpop.f32.mrb[7].mxu1  ;;  %v1398_v60 = vpop.f32.mrb[9].mxu0 }
 0x13a   : > { %1727 = vst.msk [vmem:[%s2997_s14 + $0x18] sm:$0xff] %vm1723_vm4, %v1694_v35  ;;  %v1693_v13 = vsel %vm1629_vm7, %v1597_v48, %v1661_v1  ;;  %v1599_v19 = vadd.f32 %v2987_v46, %v1560_v8  ;;  %v2308_v43 = vadd.f32 %v1388_v37, %v884_v57 }
 0x13b   : > { %1726 = vst.msk [vmem:[%s2997_s14 + $0x10] sm:$0xff] %vm1723_vm4, %v1693_v13  ;;  %vm1632_vm8 = vcmp.ge.f32.partialorder %v1600_v40, 0.0  ;;  %v1664_v44 = vmul.f32 0.01, %v1600_v40  ;;  %v1563_v2 = vmul.f32 %v2307_v54, %v2982_v34 }
 0x13c   : > { %vm1631_vm9 = vcmp.ge.f32.partialorder %v1599_v19, 0.0  ;;  %v1663_v27 = vmul.f32 0.01, %v1599_v19  ;;  %v1562_v49 = vmul.f32 %v2308_v43, %v2982_v34  ;;  %v2167_v15 = vpop.f32.mrb[8].mxu1  ;;  %v2270_v28 = vpop.f32.mrb[10].mxu0 }
 0x13d   : > { %v1696_v4 = vsel %vm1632_vm8, %v1600_v40, %v1664_v44  ;;  %v1602_v5 = vadd.f32 %v2987_v46, %v1563_v2  ;;  %v2309_v6 = vadd.f32 %v2267_v23, %v2167_v15  ;;  %v894_v9 = vpop.f32.mrb[9].mxu1  ;;  %v1408_v14 = vpop.f32.mrb[11].mxu0 }
 0x13e   : > { %1729 = vst.msk [vmem:[%s2997_s14 + $0x28] sm:$0xff] %vm1723_vm4, %v1696_v4  ;;  %v1695_v17 = vsel %vm1631_vm9, %v1599_v19, %v1663_v27  ;;  %v1601_v22 = vadd.f32 %v2987_v46, %v1562_v49  ;;  %v2310_v24 = vadd.f32 %v1398_v60, %v894_v9 }
 0x13f   : > { %1728 = vst.msk [vmem:[%s2997_s14 + $0x20] sm:$0xff] %vm1723_vm4, %v1695_v17  ;;  %vm1634_vm10 = vcmp.ge.f32.partialorder %v1602_v5, 0.0  ;;  %v1666_v25 = vmul.f32 0.01, %v1602_v5  ;;  %v1565_v26 = vmul.f32 %v2309_v6, %v2982_v34 }
 0x140   : > { %vm1633_vm11 = vcmp.ge.f32.partialorder %v1601_v22, 0.0  ;;  %v1665_v30 = vmul.f32 0.01, %v1601_v22  ;;  %v1564_v31 = vmul.f32 %v2310_v24, %v2982_v34  ;;  %v2170_v33 = vpop.f32.mrb[10].mxu1  ;;  %v2273_v38 = vpop.f32.mrb[12].mxu0 }
 0x141   : > { %v1698_v39 = vsel %vm1634_vm10, %v1602_v5, %v1666_v25  ;;  %v1604_v41 = vadd.f32 %v2987_v46, %v1565_v26  ;;  %v2311_v42 = vadd.f32 %v2270_v28, %v2170_v33  ;;  %v904_v47 = vpop.f32.mrb[11].mxu1  ;;  %v1418_v50 = vpop.f32.mrb[13].mxu0 }
 0x142   : > { %1731 = vst.msk [vmem:[%s2997_s14 + $0x38] sm:$0xff] %vm1723_vm4, %v1698_v39  ;;  %v1697_v51 = vsel %vm1633_vm11, %v1601_v22, %v1665_v30  ;;  %v1603_v55 = vadd.f32 %v2987_v46, %v1564_v31  ;;  %v2312_v56 = vadd.f32 %v1408_v14, %v904_v47 }
 0x143   : > { %1730 = vst.msk [vmem:[%s2997_s14 + $0x30] sm:$0xff] %vm1723_vm4, %v1697_v51  ;;  %vm1636_vm12 = vcmp.ge.f32.partialorder %v1604_v41, 0.0  ;;  %v1668_v58 = vmul.f32 0.01, %v1604_v41  ;;  %v1567_v59 = vmul.f32 %v2311_v42, %v2982_v34 }
 0x144   : > { %vm1635_vm13 = vcmp.ge.f32.partialorder %v1603_v55, 0.0  ;;  %v1667_v61 = vmul.f32 0.01, %v1603_v55  ;;  %v1566_v62 = vmul.f32 %v2312_v56, %v2982_v34  ;;  %v2173_v0 = vpop.f32.mrb[12].mxu1  ;;  %v2276_v3 = vpop.f32.mrb[14].mxu0 }
 0x145   : > { %v1700_v7 = vsel %vm1636_vm12, %v1604_v41, %v1668_v58  ;;  %v1606_v10 = vadd.f32 %v2987_v46, %v1567_v59  ;;  %v2313_v11 = vadd.f32 %v2273_v38, %v2173_v0  ;;  %v914_v16 = vpop.f32.mrb[13].mxu1  ;;  %v1428_v18 = vpop.f32.mrb[15].mxu0 }
 0x146   : > { %1733 = vst.msk [vmem:[%s2997_s14 + $0x48] sm:$0xff] %vm1723_vm4, %v1700_v7  ;;  %v1699_v20 = vsel %vm1635_vm13, %v1603_v55, %v1667_v61  ;;  %v1605_v21 = vadd.f32 %v2987_v46, %v1566_v62  ;;  %v2314_v29 = vadd.f32 %v1418_v50, %v914_v16 }
 0x147   : > { %1732 = vst.msk [vmem:[%s2997_s14 + $0x40] sm:$0xff] %vm1723_vm4, %v1699_v20  ;;  %vm1638_vm14 = vcmp.ge.f32.partialorder %v1606_v10, 0.0  ;;  %v1670_v32 = vmul.f32 0.01, %v1606_v10  ;;  %v1569_v36 = vmul.f32 %v2313_v11, %v2982_v34 }
 0x148   : > { %vm1637_vm15 = vcmp.ge.f32.partialorder %v1605_v21, 0.0  ;;  %v1669_v37 = vmul.f32 0.01, %v1605_v21  ;;  %v1568_v45 = vmul.f32 %v2314_v29, %v2982_v34  ;;  %v2176_v48 = vpop.f32.mrb[14].mxu1  ;;  %v2279_v52 = vpop.f32.mrb[16].mxu0 }
 0x149   : > { %v1702_v53 = vsel %vm1638_vm14, %v1606_v10, %v1670_v32  ;;  %v1608_v63 = vadd.f32 %v2987_v46, %v1569_v36  ;;  %v2315_v1 = vadd.f32 %v2276_v3, %v2176_v48  ;;  %v924_v8 = vpop.f32.mrb[15].mxu1  ;;  %v1438_v12 = vpop.f32.mrb[17].mxu0 }
 0x14a   : > { %1735 = vst.msk [vmem:[%s2997_s14 + $0x58] sm:$0xff] %vm1723_vm4, %v1702_v53  ;;  %v1701_v23 = vsel %vm1637_vm15, %v1605_v21, %v1669_v37  ;;  %v1607_v35 = vadd.f32 %v2987_v46, %v1568_v45  ;;  %v2316_v40 = vadd.f32 %v1428_v18, %v924_v8 }
 0x14b   : > { %1734 = vst.msk [vmem:[%s2997_s14 + $0x50] sm:$0xff] %vm1723_vm4, %v1701_v23  ;;  %vm1640_vm0 = vcmp.ge.f32.partialorder %v1608_v63, 0.0  ;;  %v1672_v54 = vmul.f32 0.01, %v1608_v63  ;;  %v1571_v57 = vmul.f32 %v2315_v1, %v2982_v34 }
 0x14c   : > { %vm1639_vm1 = vcmp.ge.f32.partialorder %v1607_v35, 0.0  ;;  %v1671_v60 = vmul.f32 0.01, %v1607_v35  ;;  %v1570_v13 = vmul.f32 %v2316_v40, %v2982_v34  ;;  %v2179_v19 = vpop.f32.mrb[16].mxu1  ;;  %v2282_v43 = vpop.f32.mrb[18].mxu0 }
 0x14d   : > { %v1704_v44 = vsel %vm1640_vm0, %v1608_v63, %v1672_v54  ;;  %v1610_v2 = vadd.f32 %v2987_v46, %v1571_v57  ;;  %v2317_v27 = vadd.f32 %v2279_v52, %v2179_v19  ;;  %v934_v49 = vpop.f32.mrb[17].mxu1  ;;  %v1448_v15 = vpop.f32.mrb[19].mxu0 }
 0x14e   : > { %1737 = vst.msk [vmem:[%s2997_s14 + $0x68] sm:$0xff] %vm1723_vm4, %v1704_v44  ;;  %v1703_v28 = vsel %vm1639_vm1, %v1607_v35, %v1671_v60  ;;  %v1609_v4 = vadd.f32 %v2987_v46, %v1570_v13  ;;  %v2318_v5 = vadd.f32 %v1438_v12, %v934_v49 }
 0x14f   : > { %1736 = vst.msk [vmem:[%s2997_s14 + $0x60] sm:$0xff] %vm1723_vm4, %v1703_v28  ;;  %vm1642_vm2 = vcmp.ge.f32.partialorder %v1610_v2, 0.0  ;;  %v1674_v6 = vmul.f32 0.01, %v1610_v2  ;;  %v1573_v9 = vmul.f32 %v2317_v27, %v2982_v34 }
 0x150   : > { %vm1641_vm3 = vcmp.ge.f32.partialorder %v1609_v4, 0.0  ;;  %v1673_v14 = vmul.f32 0.01, %v1609_v4  ;;  %v1572_v17 = vmul.f32 %v2318_v5, %v2982_v34  ;;  %v2182_v22 = vpop.f32.mrb[18].mxu1  ;;  %v2285_v24 = vpop.f32.mrb[20].mxu0 }
 0x151   : > { %v1706_v25 = vsel %vm1642_vm2, %v1610_v2, %v1674_v6  ;;  %v1612_v26 = vadd.f32 %v2987_v46, %v1573_v9  ;;  %v2319_v30 = vadd.f32 %v2282_v43, %v2182_v22  ;;  %v944_v31 = vpop.f32.mrb[19].mxu1  ;;  %v1458_v33 = vpop.f32.mrb[21].mxu0 }
 0x152   : > { %1739 = vst.msk [vmem:[%s2997_s14 + $0x78] sm:$0xff] %vm1723_vm4, %v1706_v25  ;;  %v1705_v38 = vsel %vm1641_vm3, %v1609_v4, %v1673_v14  ;;  %v1611_v39 = vadd.f32 %v2987_v46, %v1572_v17  ;;  %v2320_v41 = vadd.f32 %v1448_v15, %v944_v31 }
 0x153   : > { %1738 = vst.msk [vmem:[%s2997_s14 + $0x70] sm:$0xff] %vm1723_vm4, %v1705_v38  ;;  %vm1644_vm5 = vcmp.ge.f32.partialorder %v1612_v26, 0.0  ;;  %v1676_v42 = vmul.f32 0.01, %v1612_v26  ;;  %v1575_v47 = vmul.f32 %v2319_v30, %v2982_v34 }
 0x154   : > { %vm1643_vm6 = vcmp.ge.f32.partialorder %v1611_v39, 0.0  ;;  %v1675_v50 = vmul.f32 0.01, %v1611_v39  ;;  %v1574_v51 = vmul.f32 %v2320_v41, %v2982_v34  ;;  %v2185_v55 = vpop.f32.mrb[20].mxu1  ;;  %v2288_v56 = vpop.f32.mrb[22].mxu0 }
 0x155   : > { %v1708_v58 = vsel %vm1644_vm5, %v1612_v26, %v1676_v42  ;;  %v1614_v59 = vadd.f32 %v2987_v46, %v1575_v47  ;;  %v2321_v61 = vadd.f32 %v2285_v24, %v2185_v55  ;;  %v954_v62 = vpop.f32.mrb[21].mxu1  ;;  %v1468_v0 = vpop.f32.mrb[23].mxu0 }
 0x156   : > { %1741 = vst.msk [vmem:[%s2997_s14 + $0x88] sm:$0xff] %vm1723_vm4, %v1708_v58  ;;  %v1707_v3 = vsel %vm1643_vm6, %v1611_v39, %v1675_v50  ;;  %v1613_v7 = vadd.f32 %v2987_v46, %v1574_v51  ;;  %v2322_v10 = vadd.f32 %v1458_v33, %v954_v62 }
 0x157   : > { %1740 = vst.msk [vmem:[%s2997_s14 + $0x80] sm:$0xff] %vm1723_vm4, %v1707_v3  ;;  %vm1646_vm7 = vcmp.ge.f32.partialorder %v1614_v59, 0.0  ;;  %v1678_v11 = vmul.f32 0.01, %v1614_v59  ;;  %v1577_v16 = vmul.f32 %v2321_v61, %v2982_v34 }
 0x158   : > { %vm1645_vm8 = vcmp.ge.f32.partialorder %v1613_v7, 0.0  ;;  %v1677_v18 = vmul.f32 0.01, %v1613_v7  ;;  %v1576_v20 = vmul.f32 %v2322_v10, %v2982_v34  ;;  %v2188_v21 = vpop.f32.mrb[22].mxu1  ;;  %v2291_v29 = vpop.f32.mrb[24].mxu0 }
 0x159   : > { %v1710_v32 = vsel %vm1646_vm7, %v1614_v59, %v1678_v11  ;;  %v1616_v36 = vadd.f32 %v2987_v46, %v1577_v16  ;;  %v2323_v37 = vadd.f32 %v2288_v56, %v2188_v21  ;;  %v964_v45 = vpop.f32.mrb[23].mxu1  ;;  %v1478_v48 = vpop.f32.mrb[25].mxu0 }
 0x15a   : > { %1743 = vst.msk [vmem:[%s2997_s14 + $0x98] sm:$0xff] %vm1723_vm4, %v1710_v32  ;;  %v1709_v52 = vsel %vm1645_vm8, %v1613_v7, %v1677_v18  ;;  %v1615_v53 = vadd.f32 %v2987_v46, %v1576_v20  ;;  %v2324_v63 = vadd.f32 %v1468_v0, %v964_v45 }
 0x15b   : > { %1742 = vst.msk [vmem:[%s2997_s14 + $0x90] sm:$0xff] %vm1723_vm4, %v1709_v52  ;;  %vm1648_vm9 = vcmp.ge.f32.partialorder %v1616_v36, 0.0  ;;  %v1680_v1 = vmul.f32 0.01, %v1616_v36  ;;  %v1579_v8 = vmul.f32 %v2323_v37, %v2982_v34 }
 0x15c   : > { %vm1647_vm10 = vcmp.ge.f32.partialorder %v1615_v53, 0.0  ;;  %v1679_v12 = vmul.f32 0.01, %v1615_v53  ;;  %v1578_v23 = vmul.f32 %v2324_v63, %v2982_v34  ;;  %v2191_v35 = vpop.f32.mrb[24].mxu1  ;;  %v2294_v40 = vpop.f32.mrb[26].mxu0 }
 0x15d   : > { %v1712_v54 = vsel %vm1648_vm9, %v1616_v36, %v1680_v1  ;;  %v1618_v57 = vadd.f32 %v2987_v46, %v1579_v8  ;;  %v2325_v60 = vadd.f32 %v2291_v29, %v2191_v35  ;;  %v974_v13 = vpop.f32.mrb[25].mxu1  ;;  %v1488_v19 = vpop.f32.mrb[27].mxu0 }
 0x15e   : > { %1745 = vst.msk [vmem:[%s2997_s14 + $0xa8] sm:$0xff] %vm1723_vm4, %v1712_v54  ;;  %v1711_v43 = vsel %vm1647_vm10, %v1615_v53, %v1679_v12  ;;  %v1617_v44 = vadd.f32 %v2987_v46, %v1578_v23  ;;  %v2326_v2 = vadd.f32 %v1478_v48, %v974_v13 }
 0x15f   : > { %1744 = vst.msk [vmem:[%s2997_s14 + $0xa0] sm:$0xff] %vm1723_vm4, %v1711_v43  ;;  %vm1650_vm11 = vcmp.ge.f32.partialorder %v1618_v57, 0.0  ;;  %v1682_v27 = vmul.f32 0.01, %v1618_v57  ;;  %v1581_v49 = vmul.f32 %v2325_v60, %v2982_v34 }
 0x160   : > { %vm1649_vm12 = vcmp.ge.f32.partialorder %v1617_v44, 0.0  ;;  %v1681_v15 = vmul.f32 0.01, %v1617_v44  ;;  %v1580_v28 = vmul.f32 %v2326_v2, %v2982_v34  ;;  %v2194_v4 = vpop.f32.mrb[26].mxu1  ;;  %v2297_v5 = vpop.f32.mrb[28].mxu0 }
 0x161   : > { %v1714_v6 = vsel %vm1650_vm11, %v1618_v57, %v1682_v27  ;;  %v1620_v9 = vadd.f32 %v2987_v46, %v1581_v49  ;;  %v2327_v14 = vadd.f32 %v2294_v40, %v2194_v4  ;;  %v984_v17 = vpop.f32.mrb[27].mxu1  ;;  %v1498_v22 = vpop.f32.mrb[29].mxu0 }
 0x162   : > { %1747 = vst.msk [vmem:[%s2997_s14 + $0xb8] sm:$0xff] %vm1723_vm4, %v1714_v6  ;;  %v1713_v24 = vsel %vm1649_vm12, %v1617_v44, %v1681_v15  ;;  %v1619_v25 = vadd.f32 %v2987_v46, %v1580_v28  ;;  %v2328_v26 = vadd.f32 %v1488_v19, %v984_v17 }
 0x163   : > { %1746 = vst.msk [vmem:[%s2997_s14 + $0xb0] sm:$0xff] %vm1723_vm4, %v1713_v24  ;;  %vm1652_vm13 = vcmp.ge.f32.partialorder %v1620_v9, 0.0  ;;  %v1684_v30 = vmul.f32 0.01, %v1620_v9  ;;  %v1583_v31 = vmul.f32 %v2327_v14, %v2982_v34 }
 0x164   : > { %vm1651_vm14 = vcmp.ge.f32.partialorder %v1619_v25, 0.0  ;;  %v1683_v33 = vmul.f32 0.01, %v1619_v25  ;;  %v1582_v38 = vmul.f32 %v2328_v26, %v2982_v34  ;;  %v2197_v39 = vpop.f32.mrb[28].mxu1  ;;  %v2300_v41 = vpop.f32.mrb[30].mxu0 }
 0x165   : > { %v1716_v42 = vsel %vm1652_vm13, %v1620_v9, %v1684_v30  ;;  %v1622_v47 = vadd.f32 %v2987_v46, %v1583_v31  ;;  %v2329_v50 = vadd.f32 %v2297_v5, %v2197_v39  ;;  %v994_v51 = vpop.f32.mrb[29].mxu1  ;;  %v1508_v55 = vpop.f32.mrb[31].mxu0 }
 0x166   : > { %1749 = vst.msk [vmem:[%s2997_s14 + $0xc8] sm:$0xff] %vm1723_vm4, %v1716_v42  ;;  %v1715_v56 = vsel %vm1651_vm14, %v1619_v25, %v1683_v33  ;;  %v1621_v58 = vadd.f32 %v2987_v46, %v1582_v38  ;;  %v2330_v59 = vadd.f32 %v1498_v22, %v994_v51 }
 0x167   : > { %1748 = vst.msk [vmem:[%s2997_s14 + $0xc0] sm:$0xff] %vm1723_vm4, %v1715_v56  ;;  %vm1654_vm15 = vcmp.ge.f32.partialorder %v1622_v47, 0.0  ;;  %v1686_v61 = vmul.f32 0.01, %v1622_v47  ;;  %v1585_v62 = vmul.f32 %v2329_v50, %v2982_v34 }
 0x168   : > { %vm1653_vm0 = vcmp.ge.f32.partialorder %v1621_v58, 0.0  ;;  %v1685_v0 = vmul.f32 0.01, %v1621_v58  ;;  %v1584_v3 = vmul.f32 %v2330_v59, %v2982_v34  ;;  %v2200_v7 = vpop.f32.mrb[30].mxu1 }
 0x169   : > { %v1718_v10 = vsel %vm1654_vm15, %v1622_v47, %v1686_v61  ;;  %v1624_v11 = vadd.f32 %v2987_v46, %v1585_v62  ;;  %v2331_v16 = vadd.f32 %v2300_v41, %v2200_v7  ;;  %v1004_v18 = vpop.f32.mrb[31].mxu1 }
 0x16a   : > { %1751 = vst.msk [vmem:[%s2997_s14 + $0xd8] sm:$0xff] %vm1723_vm4, %v1718_v10  ;;  %v1717_v20 = vsel %vm1653_vm0, %v1621_v58, %v1685_v0  ;;  %v1623_v21 = vadd.f32 %v2987_v46, %v1584_v3  ;;  %v2332_v29 = vadd.f32 %v1508_v55, %v1004_v18 }
 0x16b   : > { %1750 = vst.msk [vmem:[%s2997_s14 + $0xd0] sm:$0xff] %vm1723_vm4, %v1717_v20  ;;  %vm1656_vm1 = vcmp.ge.f32.partialorder %v1624_v11, 0.0  ;;  %v1688_v32 = vmul.f32 0.01, %v1624_v11  ;;  %v1587_v36 = vmul.f32 %v2331_v16, %v2982_v34 }
 0x16c   : > { %vm1655_vm2 = vcmp.ge.f32.partialorder %v1623_v21, 0.0  ;;  %v1687_v37 = vmul.f32 0.01, %v1623_v21  ;;  %v1586_v45 = vmul.f32 %v2332_v29, %v2982_v34 }
 0x16d   : > { %v1720_v48 = vsel %vm1656_vm1, %v1624_v11, %v1688_v32  ;;  %v1626_v52 = vadd.f32 %v2987_v46, %v1587_v36 }
 0x16e   : > { %1753 = vst.msk [vmem:[%s2997_s14 + $0xe8] sm:$0xff] %vm1723_vm4, %v1720_v48  ;;  %v1719_v53 = vsel %vm1655_vm2, %v1623_v21, %v1687_v37  ;;  %v1625_v63 = vadd.f32 %v2987_v46, %v1586_v45 }
 0x16f   : > { %1752 = vst.msk [vmem:[%s2997_s14 + $0xe0] sm:$0xff] %vm1723_vm4, %v1719_v53  ;;  %vm1658_vm3 = vcmp.ge.f32.partialorder %v1626_v52, 0.0  ;;  %v1690_v1 = vmul.f32 0.01, %v1626_v52 }
 0x170   : > { %vm1657_vm5 = vcmp.ge.f32.partialorder %v1625_v63, 0.0  ;;  %v1689_v8 = vmul.f32 0.01, %v1625_v63 }
 0x171   : > { %v1722_v12 = vsel %vm1658_vm3, %v1626_v52, %v1690_v1 }
 0x172   : > { %1755 = vst.msk [vmem:[%s2997_s14 + $0xf8] sm:$0xff] %vm1723_vm4, %v1722_v12  ;;  %v1721_v23 = vsel %vm1657_vm5, %v1625_v63, %v1689_v8 }
 0x173   : > { %1754 = vst.msk [vmem:[%s2997_s14 + $0xf0] sm:$0xff] %vm1723_vm4, %v1721_v23 }
 0x174 PF: > { %s15_s18 = sadd.s32 1, %s2413_s18  }
 0x175   : > { %p12_p4 = scmp.ge.s32.totalorder %s15_s18, 4  }
 0x177   :  { %14 = sbr.rel (!%p12_p4) target bundleno = 1 (0x1), region = 73 }

// kernel: upsample_block_forward.2
= control target key start
LH: loop header
LB: loop body
LE: loop exit
PB: predicated region body
PF: predicated region fallthrough
CT: control target
= control target key end

     0   :  { %s2397_s15 = smov 0   ;;  %s3006_s0 = inlined_call_operand.vmem [shape: f32[2,16,17,4], index: 0, kind: input, shape index: {}]   ;;  %s3007_s1 = inlined_call_operand.vmem [shape: f32[2,17,4], index: 1, kind: input, shape index: {}]   ;;  %s3008_s2 = inlined_call_operand.vmem [shape: f32[16,32], index: 2, kind: input, shape index: {}]   ;;  %s3009_s3 = inlined_call_operand.vmem [shape: f32[2,1,32], index: 3, kind: output, shape index: {0}]   ;;  %s3010_s4 = inlined_call_operand.vmem [shape: f32[2,1,32], index: 4, kind: output, shape index: {1}]  }
   0x1 LB: > { %s1785_s16 = sadd.s32 4294967295, %s2370_s15   ;;  %p1789_p0 = scmp.ge.s32.totalorder %s2370_s15, 1  ;;  %s2370_s15 = sphi %s2397_s15, %s15_s15  }
   0x2   : > { %p175_p1 = scmp.lt.s32.totalorder %s2370_s15, 3 }
   0x4   : > { %p176_p2 = pnand %p1789_p0, %p175_p1 }
   0x6   : > { %179 = sbr.rel (%p176_p2) target bundleno = 384 (0x180), region = 32 }
   0xd   : > { %v275_v0 = vld [vmem:[%s3008_s2 + $0x8] sm:$0xff]  ;;  %vm472_vm0 = vcmask 1043456   ;;  %p207_p3 = scmp.lt.s32.totalorder %s1785_s16, 1  ;;  %v274_v1 = vld [vmem:[%s3008_s2] sm:$0xff]  ;;  %vm407_vm1 = vcmask 31744   ;;  %vm324_vm2 = vcmask 1046528  }
   0xe   : > { %2158 = vmatprep.subr.msk.mxu0 %vm472_vm0, %v275_v0  ;;  %v1263_v2 = vrot.slane %v275_v0, 4  ;;  %v406_v3 = vrot.slane %v274_v1, 4  ;;  %vm1527_vm3 = vcmask 261120   ;;  %vm1597_vm4 = vcmask 253952  }
   0xf   : > { %2159 = vmatpush3.msk.msra.mxu0 %vm472_vm0, %v275_v0  ;;  %s3034_s16 = smov (!%p207_p3, %s1785_s16), 1 }
  0x10   : > { %2058 = vmatprep.subr.msk.mxu1 %vm472_vm0, %v406_v3  ;;  %2208 = vmatprep.subr.msk.mxu0 %vm472_vm0, %v1263_v2  ;;  %s2354_s21 = smul.u32 384, %s3034_s16  ;;  %s219_s5 = scalar_lea.vmem %s3009_s3, %s3034_s16 }
  0x11   : > { %2059 = vmatpush3.msk.msra.mxu1 %vm472_vm0, %v406_v3  ;;  %s2355_s25 = smul.u32 24, %s3034_s16  ;;  %s222_s8 = scalar_lea.vmem %s3010_s4, %s3034_s16 }
  0x12   : > { %2108 = vmatprep.subr.msk.mxu1 %vm472_vm0, %v274_v1  ;;  %s2423_s24 = scalar_lea.vmem %s3006_s0, %s2354_s21 }
  0x13   : > { %v2426_v4 = vld [vmem:[%s2423_s24 + $0x18] sm:$0xff]  ;;  %v2429_v5 = vld [vmem:[%s2423_s24 + $0x20] sm:$0xff]  ;;  %v2439_v9 = vld [vmem:[%s2423_s24 + $0x8] sm:$0xff]  ;;  %s2541_s28 = scalar_lea.vmem %s3007_s1, %s2355_s25 }
  0x14   : > { %v2432_v6 = vld [vmem:[%s2423_s24] sm:$0xff]  ;;  %v330_v7 = vrot.slane %v2426_v4, 1  ;;  %2160 = vmatprep.mubr.msk.f32.mxu0 %vm407_vm1, %v2426_v4  ;;  %v331_v8 = vrot.slane %v2429_v5, 1  ;;  %v225_v11 = vld [vmem:[%s2423_s24 + $0x10] sm:$0x1]  ;;  %v326_v12 = vrot.slane %v2439_v9, 1 }
  0x15   : > { %v325_v10 = vrot.slane %v2432_v6, 1  ;;  %2161 = vmatmul.mubr.msk.f32.vlgmr.msra.gmra.mrb[0].mxu0 %vm407_vm1, %v2429_v5  ;;  %v328_v13 = vrot.slane %v225_v11, 1  ;;  %v2447_v14 = vld [vmem:[%s2423_s24 + $0x30] sm:$0xff]  ;;  %v228_v15 = vld [vmem:[%s2423_s24 + $0x28] sm:$0x1]  ;;  %v2455_v17 = vld [vmem:[%s2423_s24 + $0x38] sm:$0xff] }
  0x16   : > { %v335_v16 = vrot.slane %v2447_v14, 1  ;;  %2163 = vmatprep.mubr.msk.f32.mxu0 %vm407_vm1, %v2447_v14  ;;  %2209 = vmatpush3.msk.msra.mxu0 %vm472_vm0, %v1263_v2  ;;  %v333_v18 = vrot.slane %v228_v15, 1  ;;  %v336_v21 = vrot.slane %v2455_v17, 1  ;;  %v2461_v22 = vsel %vm324_vm2, %v330_v7, %v331_v8  ;;  %v231_v23 = vld [vmem:[%s2423_s24 + $0x40] sm:$0x1]  ;;  %v2466_v24 = vld [vmem:[%s2423_s24 + $0x48] sm:$0xff] }
  0x17   : > { %v327_v19 = vsel %vm324_vm2, %v325_v10, %v326_v12  ;;  %v329_v20 = vsel %vm324_vm2, %v326_v12, %v328_v13  ;;  %v2478_v26 = vld [vmem:[%s2423_s24 + $0x50] sm:$0xff]  ;;  %v338_v27 = vrot.slane %v231_v23, 1  ;;  %v340_v28 = vrot.slane %v2466_v24, 1  ;;  %v2488_v31 = vld [vmem:[%s2423_s24 + $0x60] sm:$0xff]  ;;  %v234_v32 = vld [vmem:[%s2423_s24 + $0x58] sm:$0x1] }
  0x18   : > { %2060 = vmatprep.mubr.msk.f32.mxu1 %vm407_vm1, %v327_v19  ;;  %v2475_v25 = vsel %vm324_vm2, %v331_v8, %v333_v18  ;;  %v341_v29 = vrot.slane %v2478_v26, 1  ;;  %v2485_v30 = vsel %vm324_vm2, %v335_v16, %v336_v21  ;;  %v2503_v34 = vld [vmem:[%s2423_s24 + $0x68] sm:$0xff]  ;;  %v343_v35 = vrot.slane %v234_v32, 1  ;;  %v2511_v39 = vld [vmem:[%s2423_s24 + $0x78] sm:$0xff]  ;;  %v237_v40 = vld [vmem:[%s2423_s24 + $0x70] sm:$0x1] }
  0x19   : > { %2061 = vmatmul.mubr.msk.f32.vlgmr.msra.gmra.mrb[0].mxu1 %vm407_vm1, %v329_v20  ;;  %2164 = vmatmul.mubr.msk.f32.gmra.mrb[2].mxu0 %vm407_vm1, %v2455_v17  ;;  %v2498_v33 = vsel %vm324_vm2, %v336_v21, %v338_v27  ;;  %v345_v36 = vrot.slane %v2488_v31, 1  ;;  %v346_v37 = vrot.slane %v2503_v34, 1  ;;  %v2527_v42 = vld [vmem:[%s2423_s24 + $0x80] sm:$0xff]  ;;  %v348_v43 = vrot.slane %v237_v40, 1  ;;  %v2535_v47 = vld [vmem:[%s2423_s24 + $0x90] sm:$0xff]  ;;  %v2556_v51 = vld [vmem:[%s2423_s24 + $0x98] sm:$0xff] }
  0x1a   : > { %2109 = vmatpush3.msk.msra.mxu1 %vm472_vm0, %v274_v1  ;;  %2063 = vmatprep.mubr.msk.f32.mxu1 %vm407_vm1, %v2461_v22  ;;  %v2508_v38 = vsel %vm324_vm2, %v340_v28, %v341_v29  ;;  %v2522_v41 = vsel %vm324_vm2, %v341_v29, %v343_v35  ;;  %v350_v44 = vrot.slane %v2511_v39, 1  ;;  %v351_v45 = vrot.slane %v2527_v42, 1  ;;  %v240_v48 = vld [vmem:[%s2423_s24 + $0x88] sm:$0x1]  ;;  %v273_v49 = vld [vmem:[%s2541_s28 + $0x10] sm:$0x1] }
  0x1b   : > { %2166 = vmatprep.mubr.msk.f32.mxu0 %vm407_vm1, %v2466_v24  ;;  %v2532_v46 = vsel %vm324_vm2, %v345_v36, %v346_v37  ;;  %v2551_v50 = vsel %vm324_vm2, %v346_v37, %v348_v43  ;;  %v353_v52 = vrot.slane %v240_v48, 1  ;;  %v355_v53 = vrot.slane %v2535_v47, 1  ;;  %v2564_v56 = vld [vmem:[%s2423_s24 + $0xa8] sm:$0xff]  ;;  %v243_v57 = vld [vmem:[%s2423_s24 + $0xa0] sm:$0x1]  ;;  %v2583_v62 = vld [vmem:[%s2423_s24 + $0xb0] sm:$0xff] }
  0x1c   : > { %v356_v54 = vrot.slane %v2556_v51, 1  ;;  %v2561_v55 = vsel %vm324_vm2, %v350_v44, %v351_v45  ;;  %v2568_v58 = vld [vmem:[%s2541_s28 + $0x8] sm:$0xff]  ;;  %v1261_v60 = vrot.slane %v273_v49, 1  ;;  %v358_v63 = vrot.slane %v243_v57, 1  ;;  %v2596_v7 = vld [vmem:[%s2423_s24 + $0xc0] sm:$0xff]  ;;  %v2619_v18 = vld [vmem:[%s2423_s24 + $0xd8] sm:$0xff] }
  0x1d   : > { %2064 = vmatmul.mubr.msk.f32.gmra.mrb[2].mxu1 %vm407_vm1, %v2475_v25  ;;  %2167 = vmatmul.mubr.msk.f32.gmra.mrb[4].mxu0 %vm407_vm1, %v2478_v26  ;;  %v3011_v59 = vrot.slane %v2568_v58, 1  ;;  %v2578_v61 = vsel %vm324_vm2, %v351_v45, %v353_v52  ;;  %v360_v1 = vrot.slane %v2564_v56, 1  ;;  %v361_v2 = vrot.slane %v2583_v62, 1  ;;  %v246_v8 = vld [vmem:[%s2423_s24 + $0xb8] sm:$0x1]  ;;  %v2611_v11 = vld [vmem:[%s2423_s24 + $0xc8] sm:$0xff] }
  0x1e   : > { %2066 = vmatprep.mubr.msk.f32.mxu1 %vm407_vm1, %v2485_v30  ;;  %2169 = vmatprep.mubr.msk.f32.mxu0 %vm407_vm1, %v2488_v31  ;;  %v2593_v3 = vsel %vm324_vm2, %v355_v53, %v356_v54  ;;  %v2606_v10 = vsel %vm324_vm2, %v356_v54, %v358_v63  ;;  %v363_v12 = vrot.slane %v246_v8, 1  ;;  %v365_v13 = vrot.slane %v2596_v7, 1  ;;  %v249_v19 = vld [vmem:[%s2423_s24 + $0xd0] sm:$0x1]  ;;  %v2634_v21 = vld [vmem:[%s2423_s24 + $0xe0] sm:$0xff]  ;;  %v2657_v37 = vld [vmem:[%s2423_s24 + $0xf8] sm:$0xff] }
  0x1f   : > { %v2588_v0 = vsel %vm324_vm2, %v3011_v59, %v1261_v60  ;;  %v366_v15 = vrot.slane %v2611_v11, 1  ;;  %v2616_v16 = vsel %vm324_vm2, %v360_v1, %v361_v2  ;;  %v368_v23 = vrot.slane %v249_v19, 1  ;;  %v2642_v32 = vld [vmem:[%s2423_s24 + $0xf0] sm:$0xff]  ;;  %v252_v35 = vld [vmem:[%s2423_s24 + $0xe8] sm:$0x1]  ;;  %v2688_v1 = vld [vmem:[%s2423_s24 + $0x120] sm:$0xff] }
  0x20   : > { %3018 = vst [vmem:[#allocation2_spill] sm:$0xff] %v2588_v0  ;;  %v2629_v20 = vsel %vm324_vm2, %v361_v2, %v363_v12  ;;  %v370_v27 = vrot.slane %v2619_v18, 1  ;;  %v371_v28 = vrot.slane %v2634_v21, 1  ;;  %v373_v40 = vrot.slane %v252_v35, 1  ;;  %v2665_v48 = vld [vmem:[%s2423_s24 + $0x108] sm:$0xff]  ;;  %v2680_v53 = vld [vmem:[%s2423_s24 + $0x110] sm:$0xff] }
  0x21   : > { %2067 = vmatmul.mubr.msk.f32.gmra.mrb[4].mxu1 %vm407_vm1, %v2498_v33  ;;  %2170 = vmatmul.mubr.msk.f32.gmra.mrb[6].mxu0 %vm407_vm1, %v2503_v34  ;;  %v2639_v29 = vsel %vm324_vm2, %v365_v13, %v366_v15  ;;  %v2652_v36 = vsel %vm324_vm2, %v366_v15, %v368_v23  ;;  %v375_v43 = vrot.slane %v2642_v32, 1  ;;  %v376_v44 = vrot.slane %v2657_v37, 1  ;;  %v255_v49 = vld [vmem:[%s2423_s24 + $0x100] sm:$0x1]  ;;  %3019 = vst [vmem:[#allocation3_spill] sm:$0xff] %v2688_v1  ;;  %v2703_v12 = vld [vmem:[%s2423_s24 + $0x128] sm:$0xff] }
  0x22   : > { %2069 = vmatprep.mubr.msk.f32.mxu1 %vm407_vm1, %v2508_v38  ;;  %2172 = vmatprep.mubr.msk.f32.mxu0 %vm407_vm1, %v2511_v39  ;;  %v2662_v45 = vsel %vm324_vm2, %v370_v27, %v371_v28  ;;  %v2675_v52 = vsel %vm324_vm2, %v371_v28, %v373_v40  ;;  %v378_v54 = vrot.slane %v255_v49, 1  ;;  %v380_v57 = vrot.slane %v2665_v48, 1  ;;  %v258_v2 = vld [vmem:[%s2423_s24 + $0x118] sm:$0x1]  ;;  %3020 = vst [vmem:[#allocation4_spill] sm:$0xff] %v2703_v12  ;;  %v2726_v40 = vld [vmem:[%s2423_s24 + $0x140] sm:$0xff] }
  0x23   : > { %v381_v60 = vrot.slane %v2680_v53, 1  ;;  %v2685_v63 = vsel %vm324_vm2, %v375_v43, %v376_v44  ;;  %v383_v13 = vrot.slane %v258_v2, 1  ;;  %v385_v15 = vrot.slane %v2688_v1, 1  ;;  %v2711_v27 = vld [vmem:[%s2423_s24 + $0x138] sm:$0xff]  ;;  %v261_v28 = vld [vmem:[%s2423_s24 + $0x130] sm:$0x1] }
  0x24   : > { %v2698_v8 = vsel %vm324_vm2, %v376_v44, %v378_v54  ;;  %v386_v19 = vrot.slane %v2703_v12, 1  ;;  %3021 = vst [vmem:[#allocation5_spill] sm:$0xff] %v2711_v27  ;;  %3022 = vst [vmem:[#allocation6_spill] sm:$0xff] %v2726_v40  ;;  %v388_v43 = vrot.slane %v261_v28, 1  ;;  %v390_v44 = vrot.slane %v2711_v27, 1 }
  0x25   : > { %2070 = vmatmul.mubr.msk.f32.gmra.mrb[6].mxu1 %vm407_vm1, %v2522_v41  ;;  %2173 = vmatmul.mubr.msk.f32.gmra.mrb[8].mxu0 %vm407_vm1, %v2527_v42  ;;  %v2708_v23 = vsel %vm324_vm2, %v380_v57, %v381_v60  ;;  %v2721_v35 = vsel %vm324_vm2, %v381_v60, %v383_v13  ;;  %v391_v49 = vrot.slane %v2726_v40, 1  ;;  %v2734_v57 = vld [vmem:[%s2423_s24 + $0x150] sm:$0xff]  ;;  %v264_v2 = vld [vmem:[%s2423_s24 + $0x148] sm:$0x1]  ;;  %v2749_v13 = vld [vmem:[%s2423_s24 + $0x158] sm:$0xff] }
  0x26   : > { %2072 = vmatprep.mubr.msk.f32.mxu1 %vm407_vm1, %v2532_v46  ;;  %2175 = vmatprep.mubr.msk.f32.mxu0 %vm407_vm1, %v2535_v47  ;;  %v2731_v54 = vsel %vm324_vm2, %v385_v15, %v386_v19  ;;  %3023 = vst [vmem:[#allocation7_spill] sm:$0xff] %v2734_v57  ;;  %v2744_v60 = vsel %vm324_vm2, %v386_v19, %v388_v43  ;;  %3024 = vst [vmem:[#allocation8_spill] sm:$0xff] %v2749_v13  ;;  %v393_v15 = vrot.slane %v264_v2, 1  ;;  %v2772_v43 = vld [vmem:[%s2423_s24 + $0x170] sm:$0xff] }
  0x27   : > { %v395_v28 = vrot.slane %v2734_v57, 1  ;;  %v396_v59 = vrot.slane %v2749_v13, 1  ;;  %v2754_v0 = vsel %vm324_vm2, %v390_v44, %v391_v49 }
  0x28   : > { %v2767_v19 = vsel %vm324_vm2, %v391_v49, %v393_v15 }
  0x29   : > { %2073 = vmatmul.mubr.msk.f32.gmra.mrb[8].mxu1 %vm407_vm1, %v2551_v50  ;;  %2176 = vmatmul.mubr.msk.f32.gmra.mrb[10].mxu0 %vm407_vm1, %v2556_v51 }
  0x2a   : > { %2075 = vmatprep.mubr.msk.f32.mxu1 %vm407_vm1, %v2561_v55  ;;  %2178 = vmatprep.mubr.msk.f32.mxu0 %vm407_vm1, %v2564_v56 }
  0x2d   : > { %2076 = vmatmul.mubr.msk.f32.gmra.mrb[10].mxu1 %vm407_vm1, %v2578_v61  ;;  %2179 = vmatmul.mubr.msk.f32.gmra.mrb[12].mxu0 %vm407_vm1, %v2583_v62 }
  0x2e   : > { %2078 = vmatprep.mubr.msk.f32.mxu1 %vm407_vm1, %v2593_v3  ;;  %2181 = vmatprep.mubr.msk.f32.mxu0 %vm407_vm1, %v2596_v7 }
  0x31   : > { %2079 = vmatmul.mubr.msk.f32.gmra.mrb[12].mxu1 %vm407_vm1, %v2606_v10  ;;  %2182 = vmatmul.mubr.msk.f32.gmra.mrb[14].mxu0 %vm407_vm1, %v2611_v11 }
  0x32   : > { %2081 = vmatprep.mubr.msk.f32.mxu1 %vm407_vm1, %v2616_v16  ;;  %2184 = vmatprep.mubr.msk.f32.mxu0 %vm407_vm1, %v2619_v18 }
  0x35   : > { %2082 = vmatmul.mubr.msk.f32.gmra.mrb[14].mxu1 %vm407_vm1, %v2629_v20  ;;  %2185 = vmatmul.mubr.msk.f32.gmra.mrb[16].mxu0 %vm407_vm1, %v2634_v21 }
  0x36   : > { %2084 = vmatprep.mubr.msk.f32.mxu1 %vm407_vm1, %v2639_v29  ;;  %2187 = vmatprep.mubr.msk.f32.mxu0 %vm407_vm1, %v2642_v32 }
  0x39   : > { %2085 = vmatmul.mubr.msk.f32.gmra.mrb[16].mxu1 %vm407_vm1, %v2652_v36  ;;  %2188 = vmatmul.mubr.msk.f32.gmra.mrb[18].mxu0 %vm407_vm1, %v2657_v37 }
  0x3a   : > { %2087 = vmatprep.mubr.msk.f32.mxu1 %vm407_vm1, %v2662_v45  ;;  %2190 = vmatprep.mubr.msk.f32.mxu0 %vm407_vm1, %v2665_v48 }
  0x3d   : > { %2088 = vmatmul.mubr.msk.f32.gmra.mrb[18].mxu1 %vm407_vm1, %v2675_v52  ;;  %2191 = vmatmul.mubr.msk.f32.gmra.mrb[20].mxu0 %vm407_vm1, %v2680_v53 }
  0x3e   : > { %2090 = vmatprep.mubr.msk.f32.mxu1 %vm407_vm1, %v2685_v63  ;;  %2193 = vmatprep.mubr.msk.f32.mxu0 %vm407_vm1, %v2688_v1  ;;  %v270_v1 = vld [vmem:[%s2423_s24 + $0x178] sm:$0x1] }
  0x3f   : > { %v403_v49 = vrot.slane %v270_v1, 1 }
  0x41   : > { %2091 = vmatmul.mubr.msk.f32.gmra.mrb[20].mxu1 %vm407_vm1, %v2698_v8  ;;  %2194 = vmatmul.mubr.msk.f32.gmra.mrb[22].mxu0 %vm407_vm1, %v2703_v12  ;;  %v2777_v12 = vsel %vm324_vm2, %v395_v28, %v396_v59 }
  0x42   : > { %2093 = vmatprep.mubr.msk.f32.mxu1 %vm407_vm1, %v2708_v23  ;;  %2196 = vmatprep.mubr.msk.f32.mxu0 %vm407_vm1, %v2711_v27  ;;  %v267_v27 = vld [vmem:[%s2423_s24 + $0x160] sm:$0x1] }
  0x43   : > { %v398_v44 = vrot.slane %v267_v27, 1 }
  0x45   : > { %2094 = vmatmul.mubr.msk.f32.gmra.mrb[22].mxu1 %vm407_vm1, %v2721_v35  ;;  %2197 = vmatmul.mubr.msk.f32.gmra.mrb[24].mxu0 %vm407_vm1, %v2726_v40  ;;  %v2757_v40 = vld [vmem:[%s2423_s24 + $0x168] sm:$0xff]  ;;  %v2790_v27 = vsel %vm324_vm2, %v396_v59, %v398_v44 }
  0x46   : > { %2096 = vmatprep.mubr.msk.f32.mxu1 %vm407_vm1, %v2731_v54  ;;  %2199 = vmatprep.mubr.msk.f32.mxu0 %vm407_vm1, %v2734_v57  ;;  %v400_v2 = vrot.slane %v2757_v40, 1  ;;  %v401_v57 = vrot.slane %v2772_v43, 1 }
  0x48   : > { %v402_v15 = vsel %vm324_vm2, %v400_v2, %v401_v57  ;;  %v404_v28 = vsel %vm324_vm2, %v401_v57, %v403_v49 }
  0x49   : > { %2097 = vmatmul.mubr.msk.f32.gmra.mrb[24].mxu1 %vm407_vm1, %v2744_v60  ;;  %2200 = vmatmul.mubr.msk.f32.gmra.mrb[26].mxu0 %vm407_vm1, %v2749_v13  ;;  %v2780_v13 = vld [vmem:[%s2541_s28] sm:$0xff] }
  0x4a   : > { %2099 = vmatprep.mubr.msk.f32.mxu1 %vm407_vm1, %v2754_v0  ;;  %2202 = vmatprep.mubr.msk.f32.mxu0 %vm407_vm1, %v2757_v40 }
  0x4d   : > { %2100 = vmatmul.mubr.msk.f32.gmra.mrb[26].mxu1 %vm407_vm1, %v2767_v19  ;;  %2203 = vmatmul.mubr.msk.f32.gmra.mrb[28].mxu0 %vm407_vm1, %v2772_v43 }
  0x4e   : > { %2102 = vmatprep.mubr.msk.f32.mxu1 %vm407_vm1, %v2777_v12  ;;  %2205 = vmatprep.mubr.msk.f32.mxu0 %vm407_vm1, %v2780_v13 }
  0x51   : > { %2103 = vmatmul.mubr.msk.f32.gmra.mrb[28].mxu1 %vm407_vm1, %v2790_v27  ;;  %2206 = vmatmul.mubr.msk.f32.gmra.mrb[30].mxu0 %vm407_vm1, %v2568_v58 }
  0x52   : > { %2105 = vmatprep.mubr.msk.f32.mxu1 %vm407_vm1, %v402_v15  ;;  %2210 = vmatprep.mubr.msk.f32.mxu0 %vm407_vm1, %v2461_v22  ;;  %v3029_v22 = vld [vmem:[#allocation6_spill] sm:$0xff] }
  0x55   : > { %2106 = vmatmul.mubr.msk.f32.gmra.mrb[30].mxu1 %vm407_vm1, %v404_v28  ;;  %2211 = vmatmul.mubr.msk.f32.vlgmr.msra.gmra.mrb[0].mxu0 %vm407_vm1, %v2475_v25  ;;  %v3031_v25 = vld [vmem:[#allocation8_spill] sm:$0xff] }
  0x56   : > { %2110 = vmatprep.mubr.msk.f32.mxu1 %vm407_vm1, %v2432_v6  ;;  %2213 = vmatprep.mubr.msk.f32.mxu0 %vm407_vm1, %v2485_v30  ;;  %v3026_v6 = vld [vmem:[#allocation4_spill] sm:$0xff] }
  0x59   : > { %2111 = vmatmul.mubr.msk.f32.vlgmr.msra.gmra.mrb[0].mxu1 %vm407_vm1, %v2439_v9  ;;  %2214 = vmatmul.mubr.msk.f32.gmra.mrb[2].mxu0 %vm407_vm1, %v2498_v33  ;;  %v3027_v9 = vld [vmem:[#allocation5_spill] sm:$0xff] }
  0x5a   : > { %2113 = vmatprep.mubr.msk.f32.mxu1 %vm407_vm1, %v2426_v4  ;;  %2216 = vmatprep.mubr.msk.f32.mxu0 %vm407_vm1, %v2508_v38  ;;  %v3025_v4 = vld [vmem:[#allocation3_spill] sm:$0xff] }
  0x5d   : > { %2114 = vmatmul.mubr.msk.f32.gmra.mrb[2].mxu1 %vm407_vm1, %v2429_v5  ;;  %2217 = vmatmul.mubr.msk.f32.gmra.mrb[4].mxu0 %vm407_vm1, %v2522_v41  ;;  %v1258_v5 = vrot.slane %v2780_v13, 1 }
  0x5e   : > { %2116 = vmatprep.mubr.msk.f32.mxu1 %vm407_vm1, %v2447_v14  ;;  %2219 = vmatprep.mubr.msk.f32.mxu0 %vm407_vm1, %v2532_v46  ;;  %v3028_v14 = vrot.slane %v2568_v58, 1 }
  0x61   : > { %2117 = vmatmul.mubr.msk.f32.gmra.mrb[4].mxu1 %vm407_vm1, %v2455_v17  ;;  %2220 = vmatmul.mubr.msk.f32.gmra.mrb[6].mxu0 %vm407_vm1, %v2551_v50  ;;  %v1260_v17 = vsel %vm324_vm2, %v1258_v5, %v3028_v14 }
  0x62   : > { %2119 = vmatprep.mubr.msk.f32.mxu1 %vm407_vm1, %v2466_v24  ;;  %2222 = vmatprep.mubr.msk.f32.mxu0 %vm407_vm1, %v2561_v55  ;;  %v3030_v24 = vld [vmem:[#allocation7_spill] sm:$0xff] }
  0x65   : > { %2120 = vmatmul.mubr.msk.f32.gmra.mrb[6].mxu1 %vm407_vm1, %v2478_v26  ;;  %2223 = vmatmul.mubr.msk.f32.gmra.mrb[8].mxu0 %vm407_vm1, %v2578_v61  ;;  %v3032_v26 = vld [vmem:[#allocation2_spill] sm:$0xff] }
  0x66   : > { %2122 = vmatprep.mubr.msk.f32.mxu1 %vm407_vm1, %v2488_v31  ;;  %2225 = vmatprep.mubr.msk.f32.mxu0 %vm407_vm1, %v2593_v3 }
  0x69   : > { %2123 = vmatmul.mubr.msk.f32.gmra.mrb[8].mxu1 %vm407_vm1, %v2503_v34  ;;  %2226 = vmatmul.mubr.msk.f32.gmra.mrb[10].mxu0 %vm407_vm1, %v2606_v10 }
  0x6a   : > { %2125 = vmatprep.mubr.msk.f32.mxu1 %vm407_vm1, %v2511_v39  ;;  %2228 = vmatprep.mubr.msk.f32.mxu0 %vm407_vm1, %v2616_v16 }
  0x6d   : > { %2126 = vmatmul.mubr.msk.f32.gmra.mrb[10].mxu1 %vm407_vm1, %v2527_v42  ;;  %2229 = vmatmul.mubr.msk.f32.gmra.mrb[12].mxu0 %vm407_vm1, %v2629_v20 }
  0x6e   : > { %2128 = vmatprep.mubr.msk.f32.mxu1 %vm407_vm1, %v2535_v47  ;;  %2231 = vmatprep.mubr.msk.f32.mxu0 %vm407_vm1, %v2639_v29 }
  0x71   : > { %2129 = vmatmul.mubr.msk.f32.gmra.mrb[12].mxu1 %vm407_vm1, %v2556_v51  ;;  %2232 = vmatmul.mubr.msk.f32.gmra.mrb[14].mxu0 %vm407_vm1, %v2652_v36 }
  0x72   : > { %2131 = vmatprep.mubr.msk.f32.mxu1 %vm407_vm1, %v2564_v56  ;;  %2234 = vmatprep.mubr.msk.f32.mxu0 %vm407_vm1, %v2662_v45 }
  0x75   : > { %2132 = vmatmul.mubr.msk.f32.gmra.mrb[14].mxu1 %vm407_vm1, %v2583_v62  ;;  %2235 = vmatmul.mubr.msk.f32.gmra.mrb[16].mxu0 %vm407_vm1, %v2675_v52 }
  0x76   : > { %2134 = vmatprep.mubr.msk.f32.mxu1 %vm407_vm1, %v2596_v7  ;;  %2237 = vmatprep.mubr.msk.f32.mxu0 %vm407_vm1, %v2685_v63 }
  0x79   : > { %2135 = vmatmul.mubr.msk.f32.gmra.mrb[16].mxu1 %vm407_vm1, %v2611_v11  ;;  %2238 = vmatmul.mubr.msk.f32.gmra.mrb[18].mxu0 %vm407_vm1, %v2698_v8 }
  0x7a   : > { %2137 = vmatprep.mubr.msk.f32.mxu1 %vm407_vm1, %v2619_v18  ;;  %2240 = vmatprep.mubr.msk.f32.mxu0 %vm407_vm1, %v2708_v23 }
  0x7d   : > { %2138 = vmatmul.mubr.msk.f32.gmra.mrb[18].mxu1 %vm407_vm1, %v2634_v21  ;;  %2241 = vmatmul.mubr.msk.f32.gmra.mrb[20].mxu0 %vm407_vm1, %v2721_v35 }
  0x7e   : > { %2140 = vmatprep.mubr.msk.f32.mxu1 %vm407_vm1, %v2642_v32  ;;  %2243 = vmatprep.mubr.msk.f32.mxu0 %vm407_vm1, %v2731_v54 }
  0x81   : > { %2141 = vmatmul.mubr.msk.f32.gmra.mrb[20].mxu1 %vm407_vm1, %v2657_v37  ;;  %2244 = vmatmul.mubr.msk.f32.gmra.mrb[22].mxu0 %vm407_vm1, %v2744_v60 }
  0x82   : > { %2143 = vmatprep.mubr.msk.f32.mxu1 %vm407_vm1, %v2665_v48  ;;  %2246 = vmatprep.mubr.msk.f32.mxu0 %vm407_vm1, %v2754_v0 }
  0x85   : > { %2144 = vmatmul.mubr.msk.f32.gmra.mrb[22].mxu1 %vm407_vm1, %v2680_v53  ;;  %2247 = vmatmul.mubr.msk.f32.gmra.mrb[24].mxu0 %vm407_vm1, %v2767_v19 }
  0x86   : > { %2146 = vmatprep.mubr.msk.f32.mxu1 %vm407_vm1, %v3025_v4  ;;  %2249 = vmatprep.mubr.msk.f32.mxu0 %vm407_vm1, %v2777_v12 }
  0x89   : > { %2147 = vmatmul.mubr.msk.f32.gmra.mrb[24].mxu1 %vm407_vm1, %v3026_v6  ;;  %2250 = vmatmul.mubr.msk.f32.gmra.mrb[26].mxu0 %vm407_vm1, %v2790_v27 }
  0x8a   : > { %2149 = vmatprep.mubr.msk.f32.mxu1 %vm407_vm1, %v3027_v9  ;;  %2252 = vmatprep.mubr.msk.f32.mxu0 %vm407_vm1, %v402_v15 }
  0x8d   : > { %2150 = vmatmul.mubr.msk.f32.gmra.mrb[26].mxu1 %vm407_vm1, %v3029_v22  ;;  %2253 = vmatmul.mubr.msk.f32.gmra.mrb[28].mxu0 %vm407_vm1, %v404_v28 }
  0x8e   : > { %2152 = vmatprep.mubr.msk.f32.mxu1 %vm407_vm1, %v3030_v24  ;;  %2255 = vmatprep.mubr.msk.f32.mxu0 %vm407_vm1, %v1260_v17 }
  0x91   : > { %2153 = vmatmul.mubr.msk.f32.gmra.mrb[28].mxu1 %vm407_vm1, %v3031_v25  ;;  %2256 = vmatmul.mubr.msk.f32.gmra.mrb[30].mxu0 %vm407_vm1, %v3032_v26 }
  0x92   : > { %2155 = vmatprep.mubr.msk.f32.mxu1 %vm407_vm1, %v2757_v40 }
  0x95   : > { %2156 = vmatmul.mubr.msk.f32.gmra.mrb[30].mxu1 %vm407_vm1, %v2772_v43 }
 0x128   : > { %v2212_v30 = vpop.f32.mrb[0].mxu0 }
 0x129   : > { %v1336_v31 = vpop.f32.mrb[1].mxu0 }
 0x12c   : > { %v2112_v33 = vpop.f32.mrb[0].mxu1  ;;  %v2215_v34 = vpop.f32.mrb[2].mxu0 }
 0x12d   : > { %v2258_v38 = vadd.f32 %v2212_v30, %v2112_v33  ;;  %v832_v39 = vpop.f32.mrb[1].mxu1  ;;  %v1346_v41 = vpop.f32.mrb[3].mxu0 }
 0x12e   : > { %v2259_v42 = vadd.f32 %v1336_v31, %v832_v39 }
 0x12f   : > { %v1529_v46 = vsel %vm1527_vm3, %v2258_v38, 0.0  ;;  %v1600_v47 = vmul.f32 %v2258_v38, %v2258_v38 }
 0x130   : > { %v1528_v50 = vsel %vm1527_vm3, %v2259_v42, 0.0  ;;  %v1599_v51 = vmul.f32 %v2259_v42, %v2259_v42  ;;  %v2115_v55 = vpop.f32.mrb[2].mxu1  ;;  %v2218_v56 = vpop.f32.mrb[4].mxu0 }
 0x131   : > { %v1632_v58 = vsel %vm1527_vm3, %v1600_v47, 0.0  ;;  %v1530_v59 = vadd.f32 %v1529_v46, %v1528_v50  ;;  %v2260_v61 = vadd.f32 %v2215_v34, %v2115_v55  ;;  %v842_v62 = vpop.f32.mrb[3].mxu1  ;;  %v1356_v0 = vpop.f32.mrb[5].mxu0 }
 0x132   : > { %v1631_v3 = vsel %vm1527_vm3, %v1599_v51, 0.0  ;;  %v2261_v7 = vadd.f32 %v1346_v41, %v842_v62 }
 0x133   : > { %v1633_v10 = vadd.f32 %v1632_v58, %v1631_v3  ;;  %v1602_v11 = vmul.f32 %v2260_v61, %v2260_v61  ;;  %v1533_v45 = vsel %vm1527_vm3, %v2260_v61, 0.0 }
 0x134   : > { %v1531_v16 = vsel %vm1527_vm3, %v2261_v7, 0.0  ;;  %v1601_v18 = vmul.f32 %v2261_v7, %v2261_v7  ;;  %v2118_v20 = vpop.f32.mrb[4].mxu1  ;;  %v2221_v21 = vpop.f32.mrb[6].mxu0 }
 0x135   : > { %v1532_v29 = vadd.f32 %v1531_v16, %v1530_v59  ;;  %v2262_v32 = vadd.f32 %v2218_v56, %v2118_v20  ;;  %v852_v36 = vpop.f32.mrb[5].mxu1  ;;  %v1366_v37 = vpop.f32.mrb[7].mxu0  ;;  %v1636_v1 = vsel %vm1527_vm3, %v1602_v11, 0.0 }
 0x136   : > { %v1634_v48 = vsel %vm1527_vm3, %v1601_v18, 0.0  ;;  %v2263_v52 = vadd.f32 %v1356_v0, %v852_v36 }
 0x137   : > { %v1635_v53 = vadd.f32 %v1634_v48, %v1633_v10  ;;  %v1534_v63 = vadd.f32 %v1533_v45, %v1532_v29  ;;  %v1604_v8 = vmul.f32 %v2262_v32, %v2262_v32  ;;  %v1537_v43 = vsel %vm1527_vm3, %v2262_v32, 0.0 }
 0x138   : > { %v1535_v12 = vsel %vm1527_vm3, %v2263_v52, 0.0  ;;  %v1603_v23 = vmul.f32 %v2263_v52, %v2263_v52  ;;  %v2121_v35 = vpop.f32.mrb[6].mxu1  ;;  %v2224_v40 = vpop.f32.mrb[8].mxu0 }
 0x139   : > { %v1536_v54 = vadd.f32 %v1535_v12, %v1534_v63  ;;  %v1637_v57 = vadd.f32 %v1636_v1, %v1635_v53  ;;  %v2264_v60 = vadd.f32 %v2221_v21, %v2121_v35  ;;  %v862_v13 = vpop.f32.mrb[7].mxu1  ;;  %v1376_v19 = vpop.f32.mrb[9].mxu0  ;;  %v1640_v15 = vsel %vm1527_vm3, %v1604_v8, 0.0 }
 0x13a   : > { %v1638_v44 = vsel %vm1527_vm3, %v1603_v23, 0.0  ;;  %v2265_v2 = vadd.f32 %v1366_v37, %v862_v13 }
 0x13b   : > { %v1639_v27 = vadd.f32 %v1638_v44, %v1637_v57  ;;  %v1538_v49 = vadd.f32 %v1537_v43, %v1536_v54  ;;  %v1606_v28 = vmul.f32 %v2264_v60, %v2264_v60  ;;  %v1541_v26 = vsel %vm1527_vm3, %v2264_v60, 0.0 }
 0x13c   : > { %v1539_v4 = vsel %vm1527_vm3, %v2265_v2, 0.0  ;;  %v1605_v5 = vmul.f32 %v2265_v2, %v2265_v2  ;;  %v2124_v6 = vpop.f32.mrb[8].mxu1  ;;  %v2227_v9 = vpop.f32.mrb[10].mxu0 }
 0x13d   : > { %v1540_v14 = vadd.f32 %v1539_v4, %v1538_v49  ;;  %v1641_v17 = vadd.f32 %v1640_v15, %v1639_v27  ;;  %v2266_v22 = vadd.f32 %v2224_v40, %v2124_v6  ;;  %v872_v24 = vpop.f32.mrb[9].mxu1  ;;  %v1386_v25 = vpop.f32.mrb[11].mxu0  ;;  %v1644_v38 = vsel %vm1527_vm3, %v1606_v28, 0.0 }
 0x13e   : > { %v1642_v30 = vsel %vm1527_vm3, %v1605_v5, 0.0  ;;  %v2267_v31 = vadd.f32 %v1376_v19, %v872_v24 }
 0x13f   : > { %v1643_v33 = vadd.f32 %v1642_v30, %v1641_v17  ;;  %v1542_v34 = vadd.f32 %v1541_v26, %v1540_v14  ;;  %v1608_v39 = vmul.f32 %v2266_v22, %v2266_v22  ;;  %v1545_v59 = vsel %vm1527_vm3, %v2266_v22, 0.0 }
 0x140   : > { %v1543_v41 = vsel %vm1527_vm3, %v2267_v31, 0.0  ;;  %v1607_v42 = vmul.f32 %v2267_v31, %v2267_v31  ;;  %v2127_v46 = vpop.f32.mrb[10].mxu1  ;;  %v2230_v47 = vpop.f32.mrb[12].mxu0 }
 0x141   : > { %v1544_v50 = vadd.f32 %v1543_v41, %v1542_v34  ;;  %v1645_v51 = vadd.f32 %v1644_v38, %v1643_v33  ;;  %v2268_v55 = vadd.f32 %v2227_v9, %v2127_v46  ;;  %v882_v56 = vpop.f32.mrb[11].mxu1  ;;  %v1396_v58 = vpop.f32.mrb[13].mxu0  ;;  %v1648_v7 = vsel %vm1527_vm3, %v1608_v39, 0.0 }
 0x142   : > { %v1646_v61 = vsel %vm1527_vm3, %v1607_v42, 0.0  ;;  %v2269_v62 = vadd.f32 %v1386_v25, %v882_v56 }
 0x143   : > { %v1647_v0 = vadd.f32 %v1646_v61, %v1645_v51  ;;  %v1546_v3 = vadd.f32 %v1545_v59, %v1544_v50  ;;  %v1610_v10 = vmul.f32 %v2268_v55, %v2268_v55  ;;  %v1549_v45 = vsel %vm1527_vm3, %v2268_v55, 0.0 }
 0x144   : > { %v1547_v11 = vsel %vm1527_vm3, %v2269_v62, 0.0  ;;  %v1609_v16 = vmul.f32 %v2269_v62, %v2269_v62  ;;  %v2130_v18 = vpop.f32.mrb[12].mxu1  ;;  %v2233_v20 = vpop.f32.mrb[14].mxu0 }
 0x145   : > { %v1548_v21 = vadd.f32 %v1547_v11, %v1546_v3  ;;  %v1649_v29 = vadd.f32 %v1648_v7, %v1647_v0  ;;  %v2270_v32 = vadd.f32 %v2230_v47, %v2130_v18  ;;  %v892_v36 = vpop.f32.mrb[13].mxu1  ;;  %v1406_v37 = vpop.f32.mrb[15].mxu0  ;;  %v1652_v1 = vsel %vm1527_vm3, %v1610_v10, 0.0 }
 0x146   : > { %v1650_v48 = vsel %vm1527_vm3, %v1609_v16, 0.0  ;;  %v2271_v52 = vadd.f32 %v1396_v58, %v892_v36 }
 0x147   : > { %v1651_v53 = vadd.f32 %v1650_v48, %v1649_v29  ;;  %v1550_v63 = vadd.f32 %v1549_v45, %v1548_v21  ;;  %v1612_v8 = vmul.f32 %v2270_v32, %v2270_v32  ;;  %v1553_v43 = vsel %vm1527_vm3, %v2270_v32, 0.0 }
 0x148   : > { %v1551_v12 = vsel %vm1527_vm3, %v2271_v52, 0.0  ;;  %v1611_v23 = vmul.f32 %v2271_v52, %v2271_v52  ;;  %v2133_v35 = vpop.f32.mrb[14].mxu1  ;;  %v2236_v40 = vpop.f32.mrb[16].mxu0 }
 0x149   : > { %v1552_v54 = vadd.f32 %v1551_v12, %v1550_v63  ;;  %v1653_v57 = vadd.f32 %v1652_v1, %v1651_v53  ;;  %v2272_v60 = vadd.f32 %v2233_v20, %v2133_v35  ;;  %v902_v13 = vpop.f32.mrb[15].mxu1  ;;  %v1416_v19 = vpop.f32.mrb[17].mxu0  ;;  %v1656_v15 = vsel %vm1527_vm3, %v1612_v8, 0.0 }
 0x14a   : > { %v1654_v44 = vsel %vm1527_vm3, %v1611_v23, 0.0  ;;  %v2273_v2 = vadd.f32 %v1406_v37, %v902_v13 }
 0x14b   : > { %v1655_v27 = vadd.f32 %v1654_v44, %v1653_v57  ;;  %v1554_v49 = vadd.f32 %v1553_v43, %v1552_v54  ;;  %v1614_v28 = vmul.f32 %v2272_v60, %v2272_v60  ;;  %v1557_v26 = vsel %vm1527_vm3, %v2272_v60, 0.0 }
 0x14c   : > { %v1555_v4 = vsel %vm1527_vm3, %v2273_v2, 0.0  ;;  %v1613_v5 = vmul.f32 %v2273_v2, %v2273_v2  ;;  %v2136_v6 = vpop.f32.mrb[16].mxu1  ;;  %v2239_v9 = vpop.f32.mrb[18].mxu0 }
 0x14d   : > { %v1556_v14 = vadd.f32 %v1555_v4, %v1554_v49  ;;  %v1657_v17 = vadd.f32 %v1656_v15, %v1655_v27  ;;  %v2274_v22 = vadd.f32 %v2236_v40, %v2136_v6  ;;  %v912_v24 = vpop.f32.mrb[17].mxu1  ;;  %v1426_v25 = vpop.f32.mrb[19].mxu0  ;;  %v1660_v38 = vsel %vm1527_vm3, %v1614_v28, 0.0 }
 0x14e   : > { %v1658_v30 = vsel %vm1527_vm3, %v1613_v5, 0.0  ;;  %v2275_v31 = vadd.f32 %v1416_v19, %v912_v24 }
 0x14f   : > { %v1659_v33 = vadd.f32 %v1658_v30, %v1657_v17  ;;  %v1558_v34 = vadd.f32 %v1557_v26, %v1556_v14  ;;  %v1616_v39 = vmul.f32 %v2274_v22, %v2274_v22  ;;  %v1561_v59 = vsel %vm1527_vm3, %v2274_v22, 0.0 }
 0x150   : > { %v1559_v41 = vsel %vm1527_vm3, %v2275_v31, 0.0  ;;  %v1615_v42 = vmul.f32 %v2275_v31, %v2275_v31  ;;  %v2139_v46 = vpop.f32.mrb[18].mxu1  ;;  %v2242_v47 = vpop.f32.mrb[20].mxu0 }
 0x151   : > { %v1560_v50 = vadd.f32 %v1559_v41, %v1558_v34  ;;  %v1661_v51 = vadd.f32 %v1660_v38, %v1659_v33  ;;  %v2276_v55 = vadd.f32 %v2239_v9, %v2139_v46  ;;  %v922_v56 = vpop.f32.mrb[19].mxu1  ;;  %v1436_v58 = vpop.f32.mrb[21].mxu0  ;;  %v1664_v7 = vsel %vm1527_vm3, %v1616_v39, 0.0 }
 0x152   : > { %v1662_v61 = vsel %vm1527_vm3, %v1615_v42, 0.0  ;;  %v2277_v62 = vadd.f32 %v1426_v25, %v922_v56 }
 0x153   : > { %v1663_v0 = vadd.f32 %v1662_v61, %v1661_v51  ;;  %v1562_v3 = vadd.f32 %v1561_v59, %v1560_v50  ;;  %v1618_v10 = vmul.f32 %v2276_v55, %v2276_v55  ;;  %v1565_v45 = vsel %vm1527_vm3, %v2276_v55, 0.0 }
 0x154   : > { %v1563_v11 = vsel %vm1527_vm3, %v2277_v62, 0.0  ;;  %v1617_v16 = vmul.f32 %v2277_v62, %v2277_v62  ;;  %v2142_v18 = vpop.f32.mrb[20].mxu1  ;;  %v2245_v20 = vpop.f32.mrb[22].mxu0 }
 0x155   : > { %v1564_v21 = vadd.f32 %v1563_v11, %v1562_v3  ;;  %v1665_v29 = vadd.f32 %v1664_v7, %v1663_v0  ;;  %v2278_v32 = vadd.f32 %v2242_v47, %v2142_v18  ;;  %v932_v36 = vpop.f32.mrb[21].mxu1  ;;  %v1446_v37 = vpop.f32.mrb[23].mxu0  ;;  %v1668_v1 = vsel %vm1527_vm3, %v1618_v10, 0.0 }
 0x156   : > { %v1666_v48 = vsel %vm1527_vm3, %v1617_v16, 0.0  ;;  %v2279_v52 = vadd.f32 %v1436_v58, %v932_v36 }
 0x157   : > { %v1667_v53 = vadd.f32 %v1666_v48, %v1665_v29  ;;  %v1566_v63 = vadd.f32 %v1565_v45, %v1564_v21  ;;  %v1620_v8 = vmul.f32 %v2278_v32, %v2278_v32  ;;  %v1569_v43 = vsel %vm1527_vm3, %v2278_v32, 0.0 }
 0x158   : > { %v1567_v12 = vsel %vm1527_vm3, %v2279_v52, 0.0  ;;  %v1619_v23 = vmul.f32 %v2279_v52, %v2279_v52  ;;  %v2145_v35 = vpop.f32.mrb[22].mxu1  ;;  %v2248_v40 = vpop.f32.mrb[24].mxu0 }
 0x159   : > { %v1568_v54 = vadd.f32 %v1567_v12, %v1566_v63  ;;  %v1669_v57 = vadd.f32 %v1668_v1, %v1667_v53  ;;  %v2280_v60 = vadd.f32 %v2245_v20, %v2145_v35  ;;  %v942_v13 = vpop.f32.mrb[23].mxu1  ;;  %v1456_v19 = vpop.f32.mrb[25].mxu0  ;;  %v1672_v15 = vsel %vm1527_vm3, %v1620_v8, 0.0 }
 0x15a   : > { %v1670_v44 = vsel %vm1527_vm3, %v1619_v23, 0.0  ;;  %v2281_v2 = vadd.f32 %v1446_v37, %v942_v13 }
 0x15b   : > { %v1671_v27 = vadd.f32 %v1670_v44, %v1669_v57  ;;  %v1570_v49 = vadd.f32 %v1569_v43, %v1568_v54  ;;  %v1622_v28 = vmul.f32 %v2280_v60, %v2280_v60  ;;  %v1573_v26 = vsel %vm1527_vm3, %v2280_v60, 0.0 }
 0x15c   : > { %v1571_v4 = vsel %vm1527_vm3, %v2281_v2, 0.0  ;;  %v1621_v5 = vmul.f32 %v2281_v2, %v2281_v2  ;;  %v2148_v6 = vpop.f32.mrb[24].mxu1  ;;  %v2251_v9 = vpop.f32.mrb[26].mxu0 }
 0x15d   : > { %v1572_v14 = vadd.f32 %v1571_v4, %v1570_v49  ;;  %v1673_v17 = vadd.f32 %v1672_v15, %v1671_v27  ;;  %v2282_v22 = vadd.f32 %v2248_v40, %v2148_v6  ;;  %v952_v24 = vpop.f32.mrb[25].mxu1  ;;  %v1466_v25 = vpop.f32.mrb[27].mxu0  ;;  %v1676_v38 = vsel %vm1527_vm3, %v1622_v28, 0.0 }
 0x15e   : > { %v1674_v30 = vsel %vm1527_vm3, %v1621_v5, 0.0  ;;  %v2283_v31 = vadd.f32 %v1456_v19, %v952_v24 }
 0x15f   : > { %v1675_v33 = vadd.f32 %v1674_v30, %v1673_v17  ;;  %v1574_v34 = vadd.f32 %v1573_v26, %v1572_v14  ;;  %v1624_v39 = vmul.f32 %v2282_v22, %v2282_v22  ;;  %v1577_v59 = vsel %vm1527_vm3, %v2282_v22, 0.0 }
 0x160   : > { %v1575_v41 = vsel %vm1527_vm3, %v2283_v31, 0.0  ;;  %v1623_v42 = vmul.f32 %v2283_v31, %v2283_v31  ;;  %v2151_v46 = vpop.f32.mrb[26].mxu1  ;;  %v2254_v47 = vpop.f32.mrb[28].mxu0 }
 0x161   : > { %v1576_v50 = vadd.f32 %v1575_v41, %v1574_v34  ;;  %v1677_v51 = vadd.f32 %v1676_v38, %v1675_v33  ;;  %v2284_v55 = vadd.f32 %v2251_v9, %v2151_v46  ;;  %v962_v56 = vpop.f32.mrb[27].mxu1  ;;  %v1476_v58 = vpop.f32.mrb[29].mxu0  ;;  %v1680_v7 = vsel %vm1527_vm3, %v1624_v39, 0.0 }
 0x162   : > { %v1678_v61 = vsel %vm1527_vm3, %v1623_v42, 0.0  ;;  %v2285_v62 = vadd.f32 %v1466_v25, %v962_v56 }
 0x163   : > { %v1679_v0 = vadd.f32 %v1678_v61, %v1677_v51  ;;  %v1578_v3 = vadd.f32 %v1577_v59, %v1576_v50  ;;  %v1626_v10 = vmul.f32 %v2284_v55, %v2284_v55  ;;  %v1581_v45 = vsel %vm1527_vm3, %v2284_v55, 0.0 }
 0x164   : > { %v1579_v11 = vsel %vm1527_vm3, %v2285_v62, 0.0  ;;  %v1625_v16 = vmul.f32 %v2285_v62, %v2285_v62  ;;  %v2154_v18 = vpop.f32.mrb[28].mxu1  ;;  %v2257_v20 = vpop.f32.mrb[30].mxu0 }
 0x165   : > { %v1580_v21 = vadd.f32 %v1579_v11, %v1578_v3  ;;  %v1681_v29 = vadd.f32 %v1680_v7, %v1679_v0  ;;  %v2286_v32 = vadd.f32 %v2254_v47, %v2154_v18  ;;  %v972_v36 = vpop.f32.mrb[29].mxu1  ;;  %v1486_v37 = vpop.f32.mrb[31].mxu0  ;;  %v1684_v1 = vsel %vm1527_vm3, %v1626_v10, 0.0 }
 0x166   : > { %v1682_v48 = vsel %vm1527_vm3, %v1625_v16, 0.0  ;;  %v2287_v52 = vadd.f32 %v1476_v58, %v972_v36 }
 0x167   : > { %v1683_v53 = vadd.f32 %v1682_v48, %v1681_v29  ;;  %v1582_v63 = vadd.f32 %v1581_v45, %v1580_v21  ;;  %v1628_v8 = vmul.f32 %v2286_v32, %v2286_v32  ;;  %v1585_v13 = vsel %vm1527_vm3, %v2286_v32, 0.0 }
 0x168   : > { %v1583_v12 = vsel %vm1527_vm3, %v2287_v52, 0.0  ;;  %v1627_v23 = vmul.f32 %v2287_v52, %v2287_v52  ;;  %v2157_v35 = vpop.f32.mrb[30].mxu1 }
 0x169   : > { %v1584_v40 = vadd.f32 %v1583_v12, %v1582_v63  ;;  %v1685_v54 = vadd.f32 %v1684_v1, %v1683_v53  ;;  %v2288_v57 = vadd.f32 %v2257_v20, %v2157_v35  ;;  %v982_v60 = vpop.f32.mrb[31].mxu1  ;;  %v1688_v27 = vsel %vm1527_vm3, %v1628_v8, 0.0 }
 0x16a   : > { %v1686_v19 = vsel %vm1527_vm3, %v1627_v23, 0.0  ;;  %v2289_v43 = vadd.f32 %v1486_v37, %v982_v60 }
 0x16b   : > { %v1687_v44 = vadd.f32 %v1686_v19, %v1685_v54  ;;  %v1586_v2 = vadd.f32 %v1585_v13, %v1584_v40  ;;  %v1630_v49 = vmul.f32 %v2288_v57, %v2288_v57  ;;  %v1589_v6 = vsel %vm1527_vm3, %v2288_v57, 0.0 }
 0x16c   : > { %v1587_v15 = vsel %vm1527_vm3, %v2289_v43, 0.0  ;;  %v1629_v28 = vmul.f32 %v2289_v43, %v2289_v43 }
 0x16d   : > { %v1588_v4 = vadd.f32 %v1587_v15, %v1586_v2  ;;  %v1689_v5 = vadd.f32 %v1688_v27, %v1687_v44  ;;  %v1692_v22 = vsel %vm1527_vm3, %v1630_v49, 0.0 }
 0x16e   : > { %v1690_v9 = vsel %vm1527_vm3, %v1629_v28, 0.0 }
 0x16f   : > { %v1590_v14 = vadd.f32 %v1589_v6, %v1588_v4  ;;  %v1691_v17 = vadd.f32 %v1690_v9, %v1689_v5 }
 0x171   : > { %v1591_v24 = vrot.slane %v1590_v14, 4  ;;  %v1693_v25 = vadd.f32 %v1692_v22, %v1691_v17 }
 0x173   : > { %v1592_v26 = vadd.f32 %v1591_v24, %v1590_v14  ;;  %v1694_v30 = vrot.slane %v1693_v25, 4 }
 0x175   : > { %v1593_v31 = vrot.slane %v1592_v26, 2  ;;  %v1695_v33 = vadd.f32 %v1694_v30, %v1693_v25 }
 0x177   : > { %v1594_v34 = vadd.f32 %v1593_v31, %v1592_v26  ;;  %v1696_v38 = vrot.slane %v1695_v33, 2 }
 0x179   : > { %v1595_v39 = vrot.slane %v1594_v34, 1  ;;  %v1697_v41 = vadd.f32 %v1696_v38, %v1695_v33 }
 0x17b   : > { %v1596_v42 = vadd.f32 %v1595_v39, %v1594_v34  ;;  %v1698_v46 = vrot.slane %v1697_v41, 1 }
 0x17d   : > { %1598 = vst.msk [vmem:[%s219_s5] sm:$0x1] %vm1597_vm4, %v1596_v42  ;;  %v1699_v47 = vadd.f32 %v1698_v46, %v1697_v41 }
 0x17f   : > { %1700 = vst.msk [vmem:[%s222_s8] sm:$0x1] %vm1597_vm4, %v1699_v47 }
 0x180 PF: > { %s15_s15 = sadd.s32 1, %s2370_s15  }
 0x181   : > { %p12_p4 = scmp.ge.s32.totalorder %s15_s15, 4  }
 0x183   :  { %14 = sbr.rel (!%p12_p4) target bundleno = 1 (0x1), region = 77 }

</bundles_post_ra>
